<compile_context>
chip_gen: v6e
topology: v6e:2x2x1
jax: 0.10.0
libtpu: 0.0.40
codegen_flags: <defaults>
</compile_context>

<pallas_src>
import jax
import jax.numpy as jnp
from jax.experimental import pallas as pl
from jax.experimental.pallas import tpu as pltpu

LANE = 128


def _round_up(x, m):
    return (x + m - 1) // m * m


def _pad2(a, rows, cols):
    return jnp.pad(a, ((0, rows - a.shape[0]), (0, cols - a.shape[1])))


# ---------------------------------------------------------------------------
# fused kernel body: one grid step == one Graph_conv layer (+ readout at l==L-1)
# ---------------------------------------------------------------------------
def gcn_layer_kernel(x_ref, ef_ref, src_ref, dst_ref,
                     wn_ref, bn_ref, we_ref, be_ref, wm_ref, bm_ref,
                     wl_ref, bl_ref, out_ref,
                     h_ref, src_oh_ref, dst_oht_ref):
    l = pl.program_id(0)
    last = pl.num_programs(0) - 1
    N, P = h_ref.shape
    E = src_oh_ref.shape[0]

    @pl.when(l == 0)
    def _init():
        # node state starts as the (zero-padded) input features
        h_ref[...] = x_ref[...]
        # connectivity one-hots built in-kernel from int32 indices (VPU compares; 0/1 are
        # exact in bf16).  HBM traffic for connectivity is just 2*E int32.
        src_oh_ref[...] = (jax.lax.broadcasted_iota(jnp.int32, (E, N), 1)
                           == src_ref[...]).astype(jnp.bfloat16)          # (E, N)
        dst_oht_ref[...] = (jax.lax.broadcasted_iota(jnp.int32, (N, E), 0)
                            == dst_ref[...]).astype(jnp.bfloat16)         # (N, E)

    # --- one Graph_conv layer (bf16 MXU, f32 accumulation) ---
    h_bf = h_ref[...].astype(jnp.bfloat16)
    # lin_nodes(x)
    node_lin = jnp.dot(h_bf, wn_ref[...],
                       preferred_element_type=jnp.float32) + bn_ref[...]
    # lin_edges(edge_features): recomputed per layer from the streamed (n_e, P) block
    m_e = jnp.dot(ef_ref[...], we_ref[...],
                  preferred_element_type=jnp.float32) + be_ref[...]
    # m_n = lin_nodes(x)[src]: row gather as one-hot matmul on the MXU
    m_n = jnp.dot(src_oh_ref[...], node_lin.astype(jnp.bfloat16),
                  preferred_element_type=jnp.float32)
    # m = tanh(lin_message(m_n * m_e))   (tanh kept in f32: EUP)
    m = jnp.tanh(jnp.dot((m_n * m_e).astype(jnp.bfloat16), wm_ref[...],
                         preferred_element_type=jnp.float32) + bm_ref[...])
    # aggr='add': segment-sum over destination nodes as one-hot^T matmul
    aggr = jnp.dot(dst_oht_ref[...], m.astype(jnp.bfloat16),
                   preferred_element_type=jnp.float32)
    # update: lin_nodes(x) + aggr_out ; carried across grid steps in VMEM scratch
    h_new = node_lin + aggr
    h_ref[...] = h_new

    @pl.when(l == last)
    def _readout():
        # mean commutes with the final linear; divide by the TRUE node count explicitly
        h_mean = (jnp.sum(h_new, axis=0, keepdims=True)
                  * jnp.float32(1.0 / float(N))).astype(jnp.bfloat16)
        out_ref[...] = jnp.dot(h_mean, wl_ref[...],
                               preferred_element_type=jnp.float32) + bl_ref[...]


# ---------------------------------------------------------------------------
# parameter packing: pad feature dims to the 128-lane boundary, stack layers, bf16 weights
# ---------------------------------------------------------------------------
def prepare_packed_params(params, n_n, n_o, n_e, embedding_dim):
    P = _round_up(max(n_n, n_o), LANE)
    EMB = _round_up(embedding_dim, LANE)
    convs = params["convs"]
    wn = jnp.stack([_pad2(p["wn"], P, P) for p in convs]).astype(jnp.bfloat16)   # (L, P, P)
    bn = jnp.stack([_pad2(p["bn"], 1, P) for p in convs])                        # (L, 1, P) f32
    we = jnp.stack([_pad2(p["we"], n_e, P) for p in convs]).astype(jnp.bfloat16) # (L, n_e, P)
    be = jnp.stack([_pad2(p["be"], 1, P) for p in convs])                        # (L, 1, P) f32
    wm = jnp.stack([_pad2(p["wm"], P, P) for p in convs]).astype(jnp.bfloat16)   # (L, P, P)
    bm = jnp.stack([_pad2(p["bm"], 1, P) for p in convs])                        # (L, 1, P) f32
    wl = _pad2(params["wl"], P, EMB).astype(jnp.bfloat16)                        # (P, EMB)
    bl = _pad2(params["bl"], 1, EMB)                                             # (1, EMB) f32
    return dict(P=P, EMB=EMB, L=len(convs), wn=wn, bn=bn, we=we, be=be,
                wm=wm, bm=bm, wl=wl, bl=bl)


def _padded_bytes(rows, cols, itemsize):
    return _round_up(max(rows, 1), 8) * _round_up(max(cols, 1), LANE) * itemsize


def _vmem_budget(N, E, P, EMB, n_e):
    dbuf = 2  # Pallas double-buffers each pipelined input
    inputs = (dbuf * _padded_bytes(N, P, 4)            # x
              + dbuf * _padded_bytes(E, n_e, 2)        # edge features (bf16)
              + dbuf * _padded_bytes(E, 1, 4)          # src indices
              + dbuf * _padded_bytes(1, E, 4)          # dst indices
              + dbuf * 2 * _padded_bytes(P, P, 2)      # wn, wm tiles (bf16)
              + dbuf * _padded_bytes(n_e, P, 2)        # we tile
              + dbuf * 3 * _padded_bytes(1, P, 4)      # bn, be, bm tiles
              + dbuf * _padded_bytes(P, EMB, 2)        # wl
              + dbuf * 2 * _padded_bytes(1, EMB, 4))   # bl, out
    scratch = (_padded_bytes(N, P, 4)                  # h
               + _padded_bytes(E, N, 2)                # src one-hot (bf16)
               + _padded_bytes(N, E, 2))               # dst one-hot^T (bf16)
    est = inputs + scratch
    # generous headroom for intermediates / compiler temporaries, clamped under physical VMEM
    return int(min(100 << 20, max(32 << 20, 4 * est)))


# ---------------------------------------------------------------------------
# forward wrapper: one pallas_call, grid over layers
# ---------------------------------------------------------------------------
def gcn_forward(x, edge_index, edge_features, params, normalize=False):
    N, n_n = x.shape
    E = edge_index.shape[1]
    n_e = edge_features.shape[1]
    n_o = params["convs"][0]["wn"].shape[1]
    embedding_dim = params["wl"].shape[1]

    packed = prepare_packed_params(params, n_n, n_o, n_e, embedding_dim)
    P, EMB, L = packed["P"], packed["EMB"], packed["L"]

    x_p = _pad2(x, N, P)                                   # (N, P) f32, pad cols stay exactly 0
    ef = edge_features.astype(jnp.bfloat16)                # (E, n_e)
    src2d = edge_index[0].reshape(E, 1).astype(jnp.int32)  # PyG 'source_to_target': x_j = x[src]
    dst2d = edge_index[1].reshape(1, E).astype(jnp.int32)  # aggregation at dst

    grid_spec = pltpu.PrefetchScalarGridSpec(
        num_scalar_prefetch=0,
        grid=(L,),
        in_specs=[
            pl.BlockSpec((N, P), lambda l: (0, 0)),             # x (resident)
            pl.BlockSpec((E, n_e), lambda l: (0, 0)),           # edge features (resident)
            pl.BlockSpec((E, 1), lambda l: (0, 0)),             # src indices (resident)
            pl.BlockSpec((1, E), lambda l: (0, 0)),             # dst indices (resident)
            pl.BlockSpec((None, P, P), lambda l: (l, 0, 0)),    # wn  (streamed per layer)
            pl.BlockSpec((None, 1, P), lambda l: (l, 0, 0)),    # bn
            pl.BlockSpec((None, n_e, P), lambda l: (l, 0, 0)),  # we
            pl.BlockSpec((None, 1, P), lambda l: (l, 0, 0)),    # be
            pl.BlockSpec((None, P, P), lambda l: (l, 0, 0)),    # wm
            pl.BlockSpec((None, 1, P), lambda l: (l, 0, 0)),    # bm
            pl.BlockSpec((P, EMB), lambda l: (0, 0)),           # wl (resident)
            pl.BlockSpec((1, EMB), lambda l: (0, 0)),           # bl (resident)
        ],
        out_specs=pl.BlockSpec((1, EMB), lambda l: (0, 0)),
        scratch_shapes=[
            pltpu.VMEM((N, P), jnp.float32),     # h, carried across layers
            pltpu.VMEM((E, N), jnp.bfloat16),    # src one-hot (built at l==0)
            pltpu.VMEM((N, E), jnp.bfloat16),    # dst one-hot^T (built at l==0)
        ],
    )

    flops = int(2 * L * (N * P * P + E * n_e * P + E * N * P + E * P * P + N * E * P)
                + 2 * P * EMB)
    transcendentals = int(L * E * P)
    bytes_accessed = int(x_p.size * 4 + ef.size * 2 + src2d.size * 4 + dst2d.size * 4
                         + packed["wn"].size * 2 + packed["wm"].size * 2
                         + packed["we"].size * 2 + packed["wl"].size * 2
                         + packed["bn"].size * 4 + packed["bm"].size * 4
                         + packed["be"].size * 4 + packed["bl"].size * 4 + EMB * 4)

    out = pl.pallas_call(
        gcn_layer_kernel,
        out_shape=jax.ShapeDtypeStruct((1, EMB), jnp.float32),
        grid_spec=grid_spec,
        compiler_params=pltpu.CompilerParams(
            dimension_semantics=("arbitrary",),   # layer axis carries h: sequential
            vmem_limit_bytes=_vmem_budget(N, E, P, EMB, n_e)),
        cost_estimate=pl.CostEstimate(flops=flops, transcendentals=transcendentals,
                                      bytes_accessed=bytes_accessed),
    )(x_p, ef, src2d, dst2d,
      packed["wn"], packed["bn"], packed["we"], packed["be"],
      packed["wm"], packed["bm"], packed["wl"], packed["bl"])

    out = out[0, :embedding_dim]  # drop lane padding
    if normalize:
        out = out / jnp.linalg.norm(out)
    return out


# ---------------------------------------------------------------------------
# pure-JAX f32 reference (for correctness check), un-padded params
# ---------------------------------------------------------------------------
def gcn_reference(x, edge_index, edge_features, params):
    N = x.shape[0]
    src, dst = edge_index[0], edge_index[1]
    h = x
    for p in params["convs"]:
        node_lin = h @ p["wn"] + p["bn"]
        m_n = node_lin[src]
        m_e = edge_features @ p["we"] + p["be"]
        m = jnp.tanh((m_n * m_e) @ p["wm"] + p["bm"])
        aggr = jax.ops.segment_sum(m, dst, num_segments=N)
        h = node_lin + aggr
    emb = h @ params["wl"] + params["bl"]
    return jnp.mean(emb, axis=0)


# ---------------------------------------------------------------------------
# deterministic parameter init (PyTorch nn.Linear default: U(-1/sqrt(fan_in), ..))
# ---------------------------------------------------------------------------
def linear_init(key, fan_in, fan_out):
    k1, k2 = jax.random.split(key)
    bound = 1.0 / float(fan_in) ** 0.5
    w = jax.random.uniform(k1, (fan_in, fan_out), jnp.float32, -bound, bound)
    b = jax.random.uniform(k2, (1, fan_out), jnp.float32, -bound, bound)
    return w, b


def init_gcn_params(key, n_n, n_e, n_o, embedding_dim, nlayers):
    keys = jax.random.split(key, 3 * nlayers + 2)
    convs = []
    for layer in range(nlayers):
        fin = n_n if layer == 0 else n_o
        wn, bn = linear_init(keys[3 * layer + 0], fin, n_o)
        we, be = linear_init(keys[3 * layer + 1], n_e, n_o)
        wm, bm = linear_init(keys[3 * layer + 2], n_o, n_o)
        convs.append(dict(wn=wn, bn=bn, we=we, be=be, wm=wm, bm=bm))
    wl, bl = linear_init(keys[-2], n_o, embedding_dim)
    # linear_node_feature params exist in the module but are unused in this path
    return dict(convs=convs, wl=wl, bl=bl)


if __name__ == "__main__":
    key = jax.random.PRNGKey(0)
    N, E = 64, 256
    n_n, n_e, n_o, embedding_dim = 32, 8, 64, 128
    nlayers = 4

    k_x, k_ei, k_ef, k_p = jax.random.split(key, 4)
    x = jax.random.normal(k_x, (N, n_n), dtype=jnp.float32)
    edge_index = jax.random.randint(k_ei, (2, E), 0, N)
    edge_features = jax.random.normal(k_ef, (E, n_e), dtype=jnp.float32)
    params = init_gcn_params(k_p, n_n, n_e, n_o, embedding_dim, nlayers)

    fwd = jax.jit(gcn_forward)
    out = jax.block_until_ready(fwd(x, edge_index, edge_features, params))
    ref = gcn_reference(x, edge_index, edge_features, params)

    assert out.shape == (embedding_dim,), out.shape
    # bf16 MXU with f32 accumulation -> loosened tolerance vs. the f32 reference
    assert jnp.allclose(out, ref, atol=5e-2, rtol=5e-2), float(jnp.max(jnp.abs(out - ref)))
    print("KERNEL_OK")
</pallas_src>

<mosaic_0001>
module attributes {stable_mosaic.version = 11 : i64} {
  func.func @gcn_layer_kernel(%arg0: i32, %arg1: memref<64x128xf32, #tpu.memory_space<vmem>>, %arg2: memref<256x8xbf16, #tpu.memory_space<vmem>>, %arg3: memref<256x1xi32, #tpu.memory_space<vmem>>, %arg4: memref<1x256xi32, #tpu.memory_space<vmem>>, %arg5: memref<1x128x128xbf16, #tpu.memory_space<vmem>>, %arg6: memref<1x1x128xf32, #tpu.memory_space<vmem>>, %arg7: memref<1x8x128xbf16, #tpu.memory_space<vmem>>, %arg8: memref<1x1x128xf32, #tpu.memory_space<vmem>>, %arg9: memref<1x128x128xbf16, #tpu.memory_space<vmem>>, %arg10: memref<1x1x128xf32, #tpu.memory_space<vmem>>, %arg11: memref<128x128xbf16, #tpu.memory_space<vmem>>, %arg12: memref<1x128xf32, #tpu.memory_space<vmem>>, %arg13: memref<1x128xf32, #tpu.memory_space<vmem>>, %arg14: memref<64x128xf32, #tpu.memory_space<vmem>>, %arg15: memref<256x64xbf16, #tpu.memory_space<vmem>>, %arg16: memref<64x256xbf16, #tpu.memory_space<vmem>>) attributes {dimension_semantics = [#tpu.dimension_semantics<arbitrary>], iteration_bounds = array<i64: 4>, scalar_prefetch = 0 : i64, scratch_operands = 3 : i64, tpu.core_type = #tpu.core_type<tc>, window_params = [{pipeline_mode = #tpu.pipeline_mode<synchronous>, transform_indices = @transform_0, window_bounds = array<i64: 64, 128>}, {pipeline_mode = #tpu.pipeline_mode<synchronous>, transform_indices = @transform_1, window_bounds = array<i64: 256, 8>}, {pipeline_mode = #tpu.pipeline_mode<synchronous>, transform_indices = @transform_2, window_bounds = array<i64: 256, 1>}, {pipeline_mode = #tpu.pipeline_mode<synchronous>, transform_indices = @transform_3, window_bounds = array<i64: 1, 256>}, {transform_indices = @transform_4, window_bounds = array<i64: 1, 128, 128>}, {transform_indices = @transform_5, window_bounds = array<i64: 1, 1, 128>}, {transform_indices = @transform_6, window_bounds = array<i64: 1, 8, 128>}, {transform_indices = @transform_7, window_bounds = array<i64: 1, 1, 128>}, {transform_indices = @transform_8, window_bounds = array<i64: 1, 128, 128>}, {transform_indices = @transform_9, window_bounds = array<i64: 1, 1, 128>}, {pipeline_mode = #tpu.pipeline_mode<synchronous>, transform_indices = @transform_10, window_bounds = array<i64: 128, 128>}, {pipeline_mode = #tpu.pipeline_mode<synchronous>, transform_indices = @transform_11, window_bounds = array<i64: 1, 128>}, {pipeline_mode = #tpu.pipeline_mode<synchronous>, transform_indices = @transform_12, window_bounds = array<i64: 1, 128>}]} {
    %c0_i32 = arith.constant 0 : i32
    %0 = arith.cmpi eq, %arg0, %c0_i32 : i32
    %1 = arith.extui %0 : i1 to i32
    %c0_i32_0 = arith.constant 0 : i32
    %2 = arith.cmpi ne, %1, %c0_i32_0 : i32
    scf.if %2 {
      %c0_33 = arith.constant 0 : index
      %c0_34 = arith.constant 0 : index
      %41 = vector.load %arg1[%c0_33, %c0_34] : memref<64x128xf32, #tpu.memory_space<vmem>>, vector<64x128xf32>
      %c0_35 = arith.constant 0 : index
      %c0_36 = arith.constant 0 : index
      %42 = vector.load %arg14[%c0_35, %c0_36] : memref<64x128xf32, #tpu.memory_space<vmem>>, vector<64x128xf32>
      tpu.vector_store %arg14[%c0_35, %c0_36], %41 {strides = array<i32>} : memref<64x128xf32, #tpu.memory_space<vmem>>, vector<64x128xf32>,
      %43 = tpu.iota {dimensions = array<i32: 1>} : vector<256x64xi32>
      %c0_37 = arith.constant 0 : index
      %c0_38 = arith.constant 0 : index
      %44 = vector.load %arg3[%c0_37, %c0_38] : memref<256x1xi32, #tpu.memory_space<vmem>>, vector<256x1xi32>
      %45 = vector.broadcast %44 : vector<256x1xi32> to vector<256x64xi32>
      %46 = arith.cmpi eq, %43, %45 : vector<256x64xi32>
      %47 = arith.extui %46 : vector<256x64xi1> to vector<256x64xi32>
      %48 = arith.sitofp %47 : vector<256x64xi32> to vector<256x64xf32>
      %49 = arith.truncf %48 : vector<256x64xf32> to vector<256x64xbf16>
      %c0_39 = arith.constant 0 : index
      %c0_40 = arith.constant 0 : index
      %50 = vector.load %arg15[%c0_39, %c0_40] : memref<256x64xbf16, #tpu.memory_space<vmem>>, vector<256x64xbf16>
      tpu.vector_store %arg15[%c0_39, %c0_40], %49 {strides = array<i32>} : memref<256x64xbf16, #tpu.memory_space<vmem>>, vector<256x64xbf16>,
      %51 = tpu.iota {dimensions = array<i32: 0>} : vector<64x256xi32>
      %c0_41 = arith.constant 0 : index
      %c0_42 = arith.constant 0 : index
      %52 = vector.load %arg4[%c0_41, %c0_42] : memref<1x256xi32, #tpu.memory_space<vmem>>, vector<1x256xi32>
      %53 = vector.broadcast %52 : vector<1x256xi32> to vector<64x256xi32>
      %54 = arith.cmpi eq, %51, %53 : vector<64x256xi32>
      %55 = arith.extui %54 : vector<64x256xi1> to vector<64x256xi32>
      %56 = arith.sitofp %55 : vector<64x256xi32> to vector<64x256xf32>
      %57 = arith.truncf %56 : vector<64x256xf32> to vector<64x256xbf16>
      %c0_43 = arith.constant 0 : index
      %c0_44 = arith.constant 0 : index
      %58 = vector.load %arg16[%c0_43, %c0_44] : memref<64x256xbf16, #tpu.memory_space<vmem>>, vector<64x256xbf16>
      tpu.vector_store %arg16[%c0_43, %c0_44], %57 {strides = array<i32>} : memref<64x256xbf16, #tpu.memory_space<vmem>>, vector<64x256xbf16>,
    } else {
    }
    %c0 = arith.constant 0 : index
    %c0_1 = arith.constant 0 : index
    %3 = vector.load %arg14[%c0, %c0_1] : memref<64x128xf32, #tpu.memory_space<vmem>>, vector<64x128xf32>
    %4 = arith.truncf %3 : vector<64x128xf32> to vector<64x128xbf16>
    %c0_2 = arith.constant 0 : index
    %c0_3 = arith.constant 0 : index
    %c0_4 = arith.constant 0 : index
    %5 = vector.load %arg5[%c0_2, %c0_3, %c0_4] : memref<1x128x128xbf16, #tpu.memory_space<vmem>>, vector<1x128x128xbf16>
    %6 = vector.shape_cast %5 : vector<1x128x128xbf16> to vector<128x128xbf16>
    %cst = arith.constant dense<0.000000e+00> : vector<64x128xf32>
    %7 = tpu.matmul %4, %6, %cst {dimension_numbers = #tpu.dot_dimension_numbers<[1], [0], [0], [1], [0, 0, 1, 1], [], []>} : vector<64x128xbf16>, vector<128x128xbf16>, vector<64x128xf32> -> vector<64x128xf32>
    %c0_5 = arith.constant 0 : index
    %c0_6 = arith.constant 0 : index
    %c0_7 = arith.constant 0 : index
    %8 = vector.load %arg6[%c0_5, %c0_6, %c0_7] : memref<1x1x128xf32, #tpu.memory_space<vmem>>, vector<1x1x128xf32>
    %9 = vector.shape_cast %8 : vector<1x1x128xf32> to vector<1x128xf32>
    %10 = vector.broadcast %9 : vector<1x128xf32> to vector<64x128xf32>
    %11 = arith.addf %7, %10 : vector<64x128xf32>
    %c0_8 = arith.constant 0 : index
    %c0_9 = arith.constant 0 : index
    %12 = vector.load %arg2[%c0_8, %c0_9] : memref<256x8xbf16, #tpu.memory_space<vmem>>, vector<256x8xbf16>
    %c0_10 = arith.constant 0 : index
    %c0_11 = arith.constant 0 : index
    %c0_12 = arith.constant 0 : index
    %13 = vector.load %arg7[%c0_10, %c0_11, %c0_12] : memref<1x8x128xbf16, #tpu.memory_space<vmem>>, vector<1x8x128xbf16>
    %14 = vector.shape_cast %13 : vector<1x8x128xbf16> to vector<8x128xbf16>
    %cst_13 = arith.constant dense<0.000000e+00> : vector<256x128xf32>
    %15 = tpu.matmul %12, %14, %cst_13 {dimension_numbers = #tpu.dot_dimension_numbers<[1], [0], [0], [1], [0, 0, 1, 1], [], []>} : vector<256x8xbf16>, vector<8x128xbf16>, vector<256x128xf32> -> vector<256x128xf32>
    %c0_14 = arith.constant 0 : index
    %c0_15 = arith.constant 0 : index
    %c0_16 = arith.constant 0 : index
    %16 = vector.load %arg8[%c0_14, %c0_15, %c0_16] : memref<1x1x128xf32, #tpu.memory_space<vmem>>, vector<1x1x128xf32>
    %17 = vector.shape_cast %16 : vector<1x1x128xf32> to vector<1x128xf32>
    %18 = vector.broadcast %17 : vector<1x128xf32> to vector<256x128xf32>
    %19 = arith.addf %15, %18 : vector<256x128xf32>
    %c0_17 = arith.constant 0 : index
    %c0_18 = arith.constant 0 : index
    %20 = vector.load %arg15[%c0_17, %c0_18] : memref<256x64xbf16, #tpu.memory_space<vmem>>, vector<256x64xbf16>
    %21 = arith.truncf %11 : vector<64x128xf32> to vector<64x128xbf16>
    %cst_19 = arith.constant dense<0.000000e+00> : vector<256x128xf32>
    %22 = tpu.matmul %20, %21, %cst_19 {dimension_numbers = #tpu.dot_dimension_numbers<[1], [0], [0], [1], [0, 0, 1, 1], [], []>} : vector<256x64xbf16>, vector<64x128xbf16>, vector<256x128xf32> -> vector<256x128xf32>
    %23 = arith.mulf %22, %19 : vector<256x128xf32>
    %24 = arith.truncf %23 : vector<256x128xf32> to vector<256x128xbf16>
    %c0_20 = arith.constant 0 : index
    %c0_21 = arith.constant 0 : index
    %c0_22 = arith.constant 0 : index
    %25 = vector.load %arg9[%c0_20, %c0_21, %c0_22] : memref<1x128x128xbf16, #tpu.memory_space<vmem>>, vector<1x128x128xbf16>
    %26 = vector.shape_cast %25 : vector<1x128x128xbf16> to vector<128x128xbf16>
    %cst_23 = arith.constant dense<0.000000e+00> : vector<256x128xf32>
    %27 = tpu.matmul %24, %26, %cst_23 {dimension_numbers = #tpu.dot_dimension_numbers<[1], [0], [0], [1], [0, 0, 1, 1], [], []>} : vector<256x128xbf16>, vector<128x128xbf16>, vector<256x128xf32> -> vector<256x128xf32>
    %c0_24 = arith.constant 0 : index
    %c0_25 = arith.constant 0 : index
    %c0_26 = arith.constant 0 : index
    %28 = vector.load %arg10[%c0_24, %c0_25, %c0_26] : memref<1x1x128xf32, #tpu.memory_space<vmem>>, vector<1x1x128xf32>
    %29 = vector.shape_cast %28 : vector<1x1x128xf32> to vector<1x128xf32>
    %30 = vector.broadcast %29 : vector<1x128xf32> to vector<256x128xf32>
    %31 = arith.addf %27, %30 : vector<256x128xf32>
    %32 = math.tanh %31 : vector<256x128xf32>
    %c0_27 = arith.constant 0 : index
    %c0_28 = arith.constant 0 : index
    %33 = vector.load %arg16[%c0_27, %c0_28] : memref<64x256xbf16, #tpu.memory_space<vmem>>, vector<64x256xbf16>
    %34 = arith.truncf %32 : vector<256x128xf32> to vector<256x128xbf16>
    %cst_29 = arith.constant dense<0.000000e+00> : vector<64x128xf32>
    %35 = tpu.matmul %33, %34, %cst_29 {dimension_numbers = #tpu.dot_dimension_numbers<[1], [0], [0], [1], [0, 0, 1, 1], [], []>} : vector<64x256xbf16>, vector<256x128xbf16>, vector<64x128xf32> -> vector<64x128xf32>
    %36 = arith.addf %11, %35 : vector<64x128xf32>
    %c0_30 = arith.constant 0 : index
    %c0_31 = arith.constant 0 : index
    %37 = vector.load %arg14[%c0_30, %c0_31] : memref<64x128xf32, #tpu.memory_space<vmem>>, vector<64x128xf32>
    tpu.vector_store %arg14[%c0_30, %c0_31], %36 {strides = array<i32>} : memref<64x128xf32, #tpu.memory_space<vmem>>, vector<64x128xf32>,
    %c3_i32 = arith.constant 3 : i32
    %38 = arith.cmpi eq, %arg0, %c3_i32 : i32
    %39 = arith.extui %38 : i1 to i32
    %c0_i32_32 = arith.constant 0 : i32
    %40 = arith.cmpi ne, %39, %c0_i32_32 : i32
    scf.if %40 {
      %cst_33 = arith.constant dense<0.000000e+00> : vector<128xf32>
      %41 = vector.multi_reduction <add>, %36, %cst_33 [0] : vector<64x128xf32> to vector<128xf32>
      %42 = vector.shape_cast %41 : vector<128xf32> to vector<1x128xf32>
      %cst_34 = arith.constant 1.562500e-02 : f32
      %43 = vector.broadcast %cst_34 : f32 to vector<1x128xf32>
      %44 = arith.mulf %42, %43 : vector<1x128xf32>
      %45 = arith.truncf %44 : vector<1x128xf32> to vector<1x128xbf16>
      %c0_35 = arith.constant 0 : index
      %c0_36 = arith.constant 0 : index
      %46 = vector.load %arg11[%c0_35, %c0_36] : memref<128x128xbf16, #tpu.memory_space<vmem>>, vector<128x128xbf16>
      %cst_37 = arith.constant dense<0.000000e+00> : vector<1x128xf32>
      %47 = tpu.matmul %45, %46, %cst_37 {dimension_numbers = #tpu.dot_dimension_numbers<[1], [0], [0], [1], [0, 0, 1, 1], [], []>} : vector<1x128xbf16>, vector<128x128xbf16>, vector<1x128xf32> -> vector<1x128xf32>
      %c0_38 = arith.constant 0 : index
      %c0_39 = arith.constant 0 : index
      %48 = vector.load %arg12[%c0_38, %c0_39] : memref<1x128xf32, #tpu.memory_space<vmem>>, vector<1x128xf32>
      %49 = arith.addf %47, %48 : vector<1x128xf32>
      %c0_40 = arith.constant 0 : index
      %c0_41 = arith.constant 0 : index
      %50 = vector.load %arg13[%c0_40, %c0_41] : memref<1x128xf32, #tpu.memory_space<vmem>>, vector<1x128xf32>
      tpu.vector_store %arg13[%c0_40, %c0_41], %49 {strides = array<i32>} : memref<1x128xf32, #tpu.memory_space<vmem>>, vector<1x128xf32>,
    } else {
    }
    return
  }
  func.func @transform_0(%arg0: i32) -> (i32, i32) {
    %c0_i32 = arith.constant 0 : i32
    %c0_i32_0 = arith.constant 0 : i32
    %c0_i32_1 = arith.constant 0 : i32
    return %c0_i32, %c0_i32_0 : i32, i32
  }
  func.func @transform_1(%arg0: i32) -> (i32, i32) {
    %c0_i32 = arith.constant 0 : i32
    %c0_i32_0 = arith.constant 0 : i32
    %c0_i32_1 = arith.constant 0 : i32
    return %c0_i32, %c0_i32_0 : i32, i32
  }
  func.func @transform_2(%arg0: i32) -> (i32, i32) {
    %c0_i32 = arith.constant 0 : i32
    %c0_i32_0 = arith.constant 0 : i32
    %c0_i32_1 = arith.constant 0 : i32
    return %c0_i32, %c0_i32_0 : i32, i32
  }
  func.func @transform_3(%arg0: i32) -> (i32, i32) {
    %c0_i32 = arith.constant 0 : i32
    %c0_i32_0 = arith.constant 0 : i32
    %c0_i32_1 = arith.constant 0 : i32
    return %c0_i32, %c0_i32_0 : i32, i32
  }
  func.func @transform_4(%arg0: i32) -> (i32, i32, i32) {
    %c0_i32 = arith.constant 0 : i32
    %c0_i32_0 = arith.constant 0 : i32
    %c0_i32_1 = arith.constant 0 : i32
    return %arg0, %c0_i32, %c0_i32_0 : i32, i32, i32
  }
  func.func @transform_5(%arg0: i32) -> (i32, i32, i32) {
    %c0_i32 = arith.constant 0 : i32
    %c0_i32_0 = arith.constant 0 : i32
    %c0_i32_1 = arith.constant 0 : i32
    return %arg0, %c0_i32, %c0_i32_0 : i32, i32, i32
  }
  func.func @transform_6(%arg0: i32) -> (i32, i32, i32) {
    %c0_i32 = arith.constant 0 : i32
    %c0_i32_0 = arith.constant 0 : i32
    %c0_i32_1 = arith.constant 0 : i32
    return %arg0, %c0_i32, %c0_i32_0 : i32, i32, i32
  }
  func.func @transform_7(%arg0: i32) -> (i32, i32, i32) {
    %c0_i32 = arith.constant 0 : i32
    %c0_i32_0 = arith.constant 0 : i32
    %c0_i32_1 = arith.constant 0 : i32
    return %arg0, %c0_i32, %c0_i32_0 : i32, i32, i32
  }
  func.func @transform_8(%arg0: i32) -> (i32, i32, i32) {
    %c0_i32 = arith.constant 0 : i32
    %c0_i32_0 = arith.constant 0 : i32
    %c0_i32_1 = arith.constant 0 : i32
    return %arg0, %c0_i32, %c0_i32_0 : i32, i32, i32
  }
  func.func @transform_9(%arg0: i32) -> (i32, i32, i32) {
    %c0_i32 = arith.constant 0 : i32
    %c0_i32_0 = arith.constant 0 : i32
    %c0_i32_1 = arith.constant 0 : i32
    return %arg0, %c0_i32, %c0_i32_0 : i32, i32, i32
  }
  func.func @transform_10(%arg0: i32) -> (i32, i32) {
    %c0_i32 = arith.constant 0 : i32
    %c0_i32_0 = arith.constant 0 : i32
    %c0_i32_1 = arith.constant 0 : i32
    return %c0_i32, %c0_i32_0 : i32, i32
  }
  func.func @transform_11(%arg0: i32) -> (i32, i32) {
    %c0_i32 = arith.constant 0 : i32
    %c0_i32_0 = arith.constant 0 : i32
    %c0_i32_1 = arith.constant 0 : i32
    return %c0_i32, %c0_i32_0 : i32, i32
  }
  func.func @transform_12(%arg0: i32) -> (i32, i32) {
    %c0_i32 = arith.constant 0 : i32
    %c0_i32_0 = arith.constant 0 : i32
    %c0_i32_1 = arith.constant 0 : i32
    return %c0_i32, %c0_i32_0 : i32, i32
  }
}

</mosaic_0001>

<bundles_post_ra>
// kernel: gcn_forward.1
= control target key start
LH: loop header
LB: loop body
LE: loop exit
PB: predicated region body
PF: predicated region fallthrough
CT: control target
= control target key end

     0   :  { %17 = vsyncpa [#allocation6], 0  ;;  %s3285_s21 = smov 0   ;;  %s3904_s0 = inlined_call_operand.vmem [shape: f32[64,128], index: 0, kind: input, shape index: {}]   ;;  %s3905_s1 = inlined_call_operand.vmem [shape: bf16[256,8], index: 1, kind: input, shape index: {}]   ;;  %s3906_s2 = inlined_call_operand.vmem [shape: s32[256,1], index: 2, kind: input, shape index: {}]   ;;  %s3907_s3 = inlined_call_operand.vmem [shape: s32[1,256], index: 3, kind: input, shape index: {}]   ;;  %s3908_s4 = inlined_call_operand.vmem [shape: bf16[4,128,128], index: 4, kind: input, shape index: {}]   ;;  %s3909_s5 = inlined_call_operand.vmem [shape: f32[4,1,128], index: 5, kind: input, shape index: {}]   ;;  %s3910_s6 = inlined_call_operand.vmem [shape: bf16[4,8,128], index: 6, kind: input, shape index: {}]   ;;  %s3911_s7 = inlined_call_operand.vmem [shape: f32[4,1,128], index: 7, kind: input, shape index: {}]   ;;  %s3912_s8 = inlined_call_operand.vmem [shape: bf16[4,128,128], index: 8, kind: input, shape index: {}]   ;;  %s3913_s9 = inlined_call_operand.vmem [shape: f32[4,1,128], index: 9, kind: input, shape index: {}]   ;;  %s3914_s10 = inlined_call_operand.vmem [shape: bf16[128,128], index: 10, kind: input, shape index: {}]   ;;  %s3915_s11 = inlined_call_operand.vmem [shape: f32[1,128], index: 11, kind: input, shape index: {}]   ;;  %s3916_s12 = inlined_call_operand.hbm [shape: f32[1,128], index: 12, kind: output, shape index: {}]  }
   0x1 LB: > { %3918 = sst [smem:[#allocation8_spill]] %s3213_s21  ;;  %s3291_s22 = sadd.s32 4294967295, %s3213_s21   ;;  %s3213_s21 = sphi %s3285_s21, %s23_s21  }
   0x2   : > { %p2499_p0 = scmp.ge.s32.totalorder %s3213_s21, 1  ;;  %p401_p1 = scmp.lt.s32.totalorder %s3213_s21, 5 }
   0x4   : > { %p402_p2 = pnand %p2499_p0, %p401_p1 }
   0x5   : > { %p456_p3 = scmp.lt.s32.totalorder (!%p402_p2), %s3291_s22, 3  ;;  %p2505_p4 = scmp.ne.s32.totalorder (!%p402_p2), %s3291_s22, 0 }
   0x6   : > { %405 = sbr.rel (%p402_p2) target bundleno = 1448 (0x5a8), region = 68 }
   0xb   : > { %s3297_s23 = scalar_select %p456_p3, %s3291_s22, 3 }
   0xc   : > { %483 = sbr.rel (%p2505_p4) target bundleno = 208 (0xd0), region = 72 }
   0xd   : > { %s2698_s24 = sshll.u32 %s3297_s23, 6  ;;  %s2502_s13 = sshll.u32 %s3297_s23, 2 }
   0xe   : > { %s3307_s30 = scalar_lea.vmem %s3908_s4, %s2698_s24  ;;  %s3313_s16 = scalar_lea.vmem %s3910_s6, %s2502_s13 }
   0xf   : > { %s470_s19 = scalar_lea.vmem %s3911_s7, %s3297_s23  ;;  %s3322_s25 = scalar_lea.vmem %s3912_s8, %s2698_s24 }
  0x10   : > { %s478_s28 = scalar_lea.vmem %s3913_s9, %s3297_s23 }
  0x11   : > { %v504_v0 = vld [vmem:[%s3906_s2 + $0x10] sm:$0xff]  ;;  %v502_v1 = vld [vmem:[%s3906_s2] sm:$0xff]  ;;  %v3215_v2 = vmov 0   ;;  %v500_v3 = vlaneseq  ;;  %v505_v4 = vld [vmem:[%s3906_s2 + $0x18] sm:$0xff]  ;;  %v3216_v23 = vmov 0.0  }
  0x12   : > { %3049 = vset.pattern.permute.xlu1 %v3215_v2  ;;  %3048 = vset.pattern.permute.xlu0 %v3215_v2  ;;  %v503_v5 = vld [vmem:[%s3906_s2 + $0x8] sm:$0xff]  ;;  %v506_v8 = vld [vmem:[%s3906_s2 + $0x20] sm:$0xff]  ;;  %v509_v15 = vld [vmem:[%s3906_s2 + $0x38] sm:$0xff] }
  0x13   : > { %541 = vperm.xlu1 %3049, %v504_v0   ;;  %535 = vperm.xlu0 %3048, %v502_v1   ;;  %v888_v6 = vshrl.u32 %v500_v3, 7  ;;  %v507_v7 = vld [vmem:[%s3906_s2 + $0x28] sm:$0xff]  ;;  %v896_v12 = vld [vmem:[%s3907_s3] sm:$0x3]  ;;  %v508_v16 = vld [vmem:[%s3906_s2 + $0x30] sm:$0xff] }
  0x14   : > { %v511_v25 = vld [vmem:[%s3906_s2 + $0x48] sm:$0xff]  ;;  %v510_v26 = vld [vmem:[%s3906_s2 + $0x40] sm:$0xff]  ;;  %v513_v34 = vld [vmem:[%s3906_s2 + $0x58] sm:$0xff] }
  0x15   : > { %v899_v9 = vsub.s32 0, %v888_v6  ;;  %v903_v10 = vsub.s32 1, %v888_v6  ;;  %v889_v11 = vadd.s32 8, %v888_v6  ;;  %v890_v13 = vadd.s32 16, %v888_v6  ;;  %v512_v35 = vld [vmem:[%s3906_s2 + $0x50] sm:$0xff]  ;;  %v515_v51 = vld [vmem:[%s3906_s2 + $0x68] sm:$0xff] }
  0x16   : > { %v891_v14 = vadd.s32 24, %v888_v6  ;;  %v892_v17 = vadd.s32 32, %v888_v6  ;;  %v893_v18 = vadd.s32 40, %v888_v6  ;;  %v894_v21 = vadd.s32 48, %v888_v6  ;;  %v514_v52 = vld [vmem:[%s3906_s2 + $0x60] sm:$0xff]  ;;  %v517_v54 = vld [vmem:[%s3906_s2 + $0x78] sm:$0xff] }
  0x17   : > { %544 = vperm.xlu1 %3049, %v505_v4   ;;  %538 = vperm.xlu0 %3048, %v503_v5   ;;  %v900_v19 = vrot.slane %v896_v12, %v899_v9  ;;  %v904_v20 = vrot.slane %v896_v12, %v903_v10  ;;  %v895_v22 = vadd.s32 56, %v888_v6  ;;  %v516_v55 = vld [vmem:[%s3906_s2 + $0x70] sm:$0xff]  ;;  %v519_v56 = vld [vmem:[%s3906_s2 + $0x88] sm:$0xff]  ;;  %v518_v57 = vld [vmem:[%s3906_s2 + $0x80] sm:$0xff] }
  0x18   : > { %v521_v58 = vld [vmem:[%s3906_s2 + $0x98] sm:$0xff]  ;;  %v520_v59 = vld [vmem:[%s3906_s2 + $0x90] sm:$0xff]  ;;  %v523_v60 = vld [vmem:[%s3906_s2 + $0xa8] sm:$0xff] }
  0x19   : > { %vm905_vm0 = vcmp.eq.s32.totalorder %v888_v6, %v900_v19  ;;  %vm906_vm1 = vcmp.eq.s32.totalorder %v888_v6, %v904_v20  ;;  %vm907_vm2 = vcmp.eq.s32.totalorder %v889_v11, %v900_v19  ;;  %vm908_vm3 = vcmp.eq.s32.totalorder %v889_v11, %v904_v20  ;;  %v522_v61 = vld [vmem:[%s3906_s2 + $0xa0] sm:$0xff]  ;;  %v525_v62 = vld [vmem:[%s3906_s2 + $0xb8] sm:$0xff]  ;;  %v524_v63 = vld [vmem:[%s3906_s2 + $0xb0] sm:$0xff] }
  0x1a   : > { %vm909_vm4 = vcmp.eq.s32.totalorder %v890_v13, %v900_v19  ;;  %vm910_vm5 = vcmp.eq.s32.totalorder %v890_v13, %v904_v20  ;;  %vm911_vm6 = vcmp.eq.s32.totalorder %v891_v14, %v900_v19  ;;  %v2570_v24 = vsel %vm905_vm0, 1.0, %v3216_v23  ;;  %v527_v0 = vld [vmem:[%s3906_s2 + $0xc8] sm:$0xff]  ;;  %v526_v1 = vld [vmem:[%s3906_s2 + $0xc0] sm:$0xff]  ;;  %v529_v2 = vld [vmem:[%s3906_s2 + $0xd8] sm:$0xff] }
  0x1b   : > { %550 = vperm.xlu1 %3049, %v507_v7   ;;  %547 = vperm.xlu0 %3048, %v506_v8   ;;  %vm912_vm7 = vcmp.eq.s32.totalorder %v891_v14, %v904_v20  ;;  %vm913_vm8 = vcmp.eq.s32.totalorder %v892_v17, %v900_v19  ;;  %vm914_vm9 = vcmp.eq.s32.totalorder %v892_v17, %v904_v20  ;;  %v2571_v27 = vsel %vm906_vm1, 1.0, %v3216_v23  ;;  %v528_v4 = vld [vmem:[%s3906_s2 + $0xd0] sm:$0xff]  ;;  %v531_v5 = vld [vmem:[%s3906_s2 + $0xe8] sm:$0xff]  ;;  %v530_v6 = vld [vmem:[%s3906_s2 + $0xe0] sm:$0xff] }
  0x1c   : > { %vm915_vm10 = vcmp.eq.s32.totalorder %v893_v18, %v900_v19  ;;  %vm916_vm11 = vcmp.eq.s32.totalorder %v893_v18, %v904_v20  ;;  %vm917_vm12 = vcmp.eq.s32.totalorder %v894_v21, %v900_v19  ;;  %vm918_vm13 = vcmp.eq.s32.totalorder %v894_v21, %v904_v20  ;;  %v533_v7 = vld [vmem:[%s3906_s2 + $0xf8] sm:$0xff]  ;;  %v532_v8 = vld [vmem:[%s3906_s2 + $0xf0] sm:$0xff]  ;;  %v484_v9 = vld [vmem:[%s3904_s0] sm:$0xff] }
  0x1d   : > { %vm919_vm14 = vcmp.eq.s32.totalorder %v895_v22, %v900_v19  ;;  %vm920_vm15 = vcmp.eq.s32.totalorder %v895_v22, %v904_v20  ;;  %v2572_v28 = vsel %vm907_vm2, 1.0, %v3216_v23  ;;  %v2573_v29 = vsel %vm908_vm3, 1.0, %v3216_v23  ;;  %v485_v10 = vld [vmem:[%s3904_s0 + $0x8] sm:$0xff]  ;;  %v486_v11 = vld [vmem:[%s3904_s0 + $0x10] sm:$0xff]  ;;  %v487_v12 = vld [vmem:[%s3904_s0 + $0x18] sm:$0xff]  ;;  %492 = vst [vmem:[#allocation2 + $0x30] sm:$0xff] %v484_v9 }
  0x1e   : > { %v2574_v30 = vsel %vm909_vm4, 1.0, %v3216_v23  ;;  %v2575_v31 = vsel %vm910_vm5, 1.0, %v3216_v23  ;;  %v2576_v32 = vsel %vm911_vm6, 1.0, %v3216_v23  ;;  %v2577_v33 = vsel %vm912_vm7, 1.0, %v3216_v23  ;;  %v488_v13 = vld [vmem:[%s3904_s0 + $0x20] sm:$0xff]  ;;  %v489_v14 = vld [vmem:[%s3904_s0 + $0x28] sm:$0xff] }
  0x1f   : > { %556 = vperm.xlu1 %3049, %v509_v15   ;;  %553 = vperm.xlu0 %3048, %v508_v16   ;;  %v2578_v36 = vsel %vm913_vm8, 1.0, %v3216_v23  ;;  %v2579_v37 = vsel %vm914_vm9, 1.0, %v3216_v23  ;;  %v2580_v38 = vsel %vm915_vm10, 1.0, %v3216_v23  ;;  %v2581_v39 = vsel %vm916_vm11, 1.0, %v3216_v23  ;;  %493 = vst [vmem:[#allocation2] sm:$0xff] %v485_v10  ;;  %494 = vst [vmem:[#allocation2 + $0x18] sm:$0xff] %v486_v11 }
  0x20   : > { %v2582_v40 = vsel %vm917_vm12, 1.0, %v3216_v23  ;;  %v2583_v41 = vsel %vm918_vm13, 1.0, %v3216_v23  ;;  %v2584_v42 = vsel %vm919_vm14, 1.0, %v3216_v23  ;;  %v2585_v43 = vsel %vm920_vm15, 1.0, %v3216_v23  ;;  %v490_v15 = vld [vmem:[%s3904_s0 + $0x30] sm:$0xff]  ;;  %v491_v16 = vld [vmem:[%s3904_s0 + $0x38] sm:$0xff] }
  0x21   : > { %v2732_v44 = vpack.c.bf16 %v2571_v27, %v2570_v24  ;;  %v2733_v45 = vpack.c.bf16 %v2573_v29, %v2572_v28  ;;  %v2734_v46 = vpack.c.bf16 %v2575_v31, %v2574_v30  ;;  %v2735_v47 = vpack.c.bf16 %v2577_v33, %v2576_v32  ;;  %495 = vst [vmem:[#allocation2 + $0x10] sm:$0xff] %v487_v12 }
  0x22   : > { %v2736_v48 = vpack.c.bf16 %v2579_v37, %v2578_v36  ;;  %v2737_v49 = vpack.c.bf16 %v2581_v39, %v2580_v38  ;;  %v2738_v50 = vpack.c.bf16 %v2583_v41, %v2582_v40  ;;  %v2739_v53 = vpack.c.bf16 %v2585_v43, %v2584_v42  ;;  %496 = vst [vmem:[#allocation2 + $0x8] sm:$0xff] %v488_v13 }
  0x23   : > { %562 = vperm.xlu1 %3049, %v511_v25   ;;  %559 = vperm.xlu0 %3048, %v510_v26   ;;  %1001 = vst [vmem:[#allocation4] sm:$0xff] %v2732_v44  ;;  %1002 = vst [vmem:[#allocation4 + $0x18] sm:$0xff] %v2733_v45  ;;  %v3485_v17 = vand.u32 127, %v500_v3  ;;  %vm854_vm2 = vcmask 519168  }
  0x24   : > { %1003 = vst [vmem:[#allocation4 + $0x10] sm:$0xff] %v2734_v46  ;;  %1004 = vst [vmem:[#allocation4 + $0x20] sm:$0xff] %v2735_v47 }
  0x25   : > { %1005 = vst [vmem:[#allocation4 + $0x28] sm:$0xff] %v2736_v48  ;;  %1006 = vst [vmem:[#allocation4 + $0x8] sm:$0xff] %v2737_v49 }
  0x26   : > { %1007 = vst [vmem:[#allocation4 + $0x30] sm:$0xff] %v2738_v50  ;;  %1008 = vst [vmem:[#allocation4 + $0x38] sm:$0xff] %v2739_v53 }
  0x27   : > { %568 = vperm.xlu1 %3049, %v513_v34   ;;  %565 = vperm.xlu0 %3048, %v512_v35   ;;  %497 = vst [vmem:[#allocation2 + $0x20] sm:$0xff] %v489_v14  ;;  %498 = vst [vmem:[#allocation2 + $0x28] sm:$0xff] %v490_v15 }
  0x28   : > { %499 = vst [vmem:[#allocation2 + $0x38] sm:$0xff] %v491_v16 }
  0x2b   : > { %574 = vperm.xlu1 %3049, %v515_v51   ;;  %571 = vperm.xlu0 %3048, %v514_v52  }
  0x2f   : > { %580 = vperm.xlu1 %3049, %v517_v54   ;;  %577 = vperm.xlu0 %3048, %v516_v55  }
  0x33   : > { %586 = vperm.xlu1 %3049, %v519_v56   ;;  %583 = vperm.xlu0 %3048, %v518_v57  }
  0x37   : > { %592 = vperm.xlu1 %3049, %v521_v58   ;;  %589 = vperm.xlu0 %3048, %v520_v59  }
  0x3b   : > { %598 = vperm.xlu1 %3049, %v523_v60   ;;  %595 = vperm.xlu0 %3048, %v522_v61  }
  0x3f   : > { %604 = vperm.xlu1 %3049, %v525_v62   ;;  %601 = vperm.xlu0 %3048, %v524_v63  }
  0x43   : > { %610 = vperm.xlu1 %3049, %v527_v0   ;;  %607 = vperm.xlu0 %3048, %v526_v1  }
  0x47   : > { %616 = vperm.xlu1 %3049, %v529_v2   ;;  %613 = vperm.xlu0 %3048, %v528_v4  }
  0x4b   : > { %622 = vperm.xlu1 %3049, %v531_v5   ;;  %619 = vperm.xlu0 %3048, %v530_v6  }
  0x4f   : > { %628 = vperm.xlu1 %3049, %v533_v7   ;;  %625 = vperm.xlu0 %3048, %v532_v8  }
  0x8e   : > { %v542_v18 = vpop.permute.xlu1 %541  ;;  %v536_v19 = vpop.permute.xlu0 %535 }
  0x8f   : > { %vm632_vm0 = vcmp.eq.s32.totalorder %v3485_v17, %v542_v18  ;;  %vm630_vm1 = vcmp.eq.s32.totalorder %v3485_v17, %v536_v19 }
  0x90   : > { %v2508_v20 = vsel %vm632_vm0, 1.0, %v3216_v23  ;;  %v2506_v21 = vsel %vm630_vm1, 1.0, %v3216_v23 }
  0x91   : > { %v2702_v22 = vpack.c.bf16 %v2508_v20, %v2508_v20  ;;  %v2700_v24 = vpack.c.bf16 %v2506_v21, %v2506_v21 }
  0x92   : > { %v545_v25 = vpop.permute.xlu1 %544  ;;  %v539_v26 = vpop.permute.xlu0 %538 }
  0x93   : > { %857 = vst.msk [vmem:[#allocation3 + $0x8] sm:$0xf] %vm854_vm2, %v2702_v22  ;;  %855 = vst.msk [vmem:[#allocation3] sm:$0xf] %vm854_vm2, %v2700_v24  ;;  %vm633_vm3 = vcmp.eq.s32.totalorder %v3485_v17, %v545_v25  ;;  %vm631_vm4 = vcmp.eq.s32.totalorder %v3485_v17, %v539_v26 }
  0x94   : > { %v2509_v3 = vsel %vm633_vm3, 1.0, %v3216_v23  ;;  %v2507_v27 = vsel %vm631_vm4, 1.0, %v3216_v23 }
  0x95   : > { %v2703_v28 = vpack.c.bf16 %v2509_v3, %v2509_v3  ;;  %v2701_v29 = vpack.c.bf16 %v2507_v27, %v2507_v27 }
  0x96   : > { %v551_v30 = vpop.permute.xlu1 %550  ;;  %v548_v31 = vpop.permute.xlu0 %547 }
  0x97   : > { %858 = vst.msk [vmem:[#allocation3 + $0xc] sm:$0xf] %vm854_vm2, %v2703_v28  ;;  %856 = vst.msk [vmem:[#allocation3 + $0x4] sm:$0xf] %vm854_vm2, %v2701_v29  ;;  %vm635_vm5 = vcmp.eq.s32.totalorder %v3485_v17, %v551_v30  ;;  %vm634_vm6 = vcmp.eq.s32.totalorder %v3485_v17, %v548_v31 }
  0x98   : > { %v2511_v32 = vsel %vm635_vm5, 1.0, %v3216_v23  ;;  %v2510_v33 = vsel %vm634_vm6, 1.0, %v3216_v23 }
  0x99   : > { %v2705_v34 = vpack.c.bf16 %v2511_v32, %v2511_v32  ;;  %v2704_v35 = vpack.c.bf16 %v2510_v33, %v2510_v33 }
  0x9a   : > { %v557_v36 = vpop.permute.xlu1 %556  ;;  %v554_v37 = vpop.permute.xlu0 %553 }
  0x9b   : > { %860 = vst.msk [vmem:[#allocation3 + $0x14] sm:$0xf] %vm854_vm2, %v2705_v34  ;;  %859 = vst.msk [vmem:[#allocation3 + $0x10] sm:$0xf] %vm854_vm2, %v2704_v35  ;;  %vm637_vm7 = vcmp.eq.s32.totalorder %v3485_v17, %v557_v36  ;;  %vm636_vm8 = vcmp.eq.s32.totalorder %v3485_v17, %v554_v37 }
  0x9c   : > { %v2513_v38 = vsel %vm637_vm7, 1.0, %v3216_v23  ;;  %v2512_v39 = vsel %vm636_vm8, 1.0, %v3216_v23 }
  0x9d   : > { %v2707_v40 = vpack.c.bf16 %v2513_v38, %v2513_v38  ;;  %v2706_v41 = vpack.c.bf16 %v2512_v39, %v2512_v39 }
  0x9e   : > { %v563_v42 = vpop.permute.xlu1 %562  ;;  %v560_v43 = vpop.permute.xlu0 %559 }
  0x9f   : > { %862 = vst.msk [vmem:[#allocation3 + $0x1c] sm:$0xf] %vm854_vm2, %v2707_v40  ;;  %861 = vst.msk [vmem:[#allocation3 + $0x18] sm:$0xf] %vm854_vm2, %v2706_v41  ;;  %vm639_vm9 = vcmp.eq.s32.totalorder %v3485_v17, %v563_v42  ;;  %vm638_vm10 = vcmp.eq.s32.totalorder %v3485_v17, %v560_v43 }
  0xa0   : > { %v2515_v44 = vsel %vm639_vm9, 1.0, %v3216_v23  ;;  %v2514_v45 = vsel %vm638_vm10, 1.0, %v3216_v23 }
  0xa1   : > { %v2709_v46 = vpack.c.bf16 %v2515_v44, %v2515_v44  ;;  %v2708_v47 = vpack.c.bf16 %v2514_v45, %v2514_v45 }
  0xa2   : > { %v569_v48 = vpop.permute.xlu1 %568  ;;  %v566_v49 = vpop.permute.xlu0 %565 }
  0xa3   : > { %864 = vst.msk [vmem:[#allocation3 + $0x24] sm:$0xf] %vm854_vm2, %v2709_v46  ;;  %863 = vst.msk [vmem:[#allocation3 + $0x20] sm:$0xf] %vm854_vm2, %v2708_v47  ;;  %vm641_vm11 = vcmp.eq.s32.totalorder %v3485_v17, %v569_v48  ;;  %vm640_vm12 = vcmp.eq.s32.totalorder %v3485_v17, %v566_v49 }
  0xa4   : > { %v2517_v50 = vsel %vm641_vm11, 1.0, %v3216_v23  ;;  %v2516_v51 = vsel %vm640_vm12, 1.0, %v3216_v23 }
  0xa5   : > { %v2711_v52 = vpack.c.bf16 %v2517_v50, %v2517_v50  ;;  %v2710_v53 = vpack.c.bf16 %v2516_v51, %v2516_v51 }
  0xa6   : > { %v575_v54 = vpop.permute.xlu1 %574  ;;  %v572_v55 = vpop.permute.xlu0 %571 }
  0xa7   : > { %866 = vst.msk [vmem:[#allocation3 + $0x2c] sm:$0xf] %vm854_vm2, %v2711_v52  ;;  %865 = vst.msk [vmem:[#allocation3 + $0x28] sm:$0xf] %vm854_vm2, %v2710_v53  ;;  %vm643_vm13 = vcmp.eq.s32.totalorder %v3485_v17, %v575_v54  ;;  %vm642_vm14 = vcmp.eq.s32.totalorder %v3485_v17, %v572_v55 }
  0xa8   : > { %v2519_v56 = vsel %vm643_vm13, 1.0, %v3216_v23  ;;  %v2518_v57 = vsel %vm642_vm14, 1.0, %v3216_v23 }
  0xa9   : > { %v2713_v58 = vpack.c.bf16 %v2519_v56, %v2519_v56  ;;  %v2712_v59 = vpack.c.bf16 %v2518_v57, %v2518_v57 }
  0xaa   : > { %v581_v60 = vpop.permute.xlu1 %580  ;;  %v578_v61 = vpop.permute.xlu0 %577 }
  0xab   : > { %868 = vst.msk [vmem:[#allocation3 + $0x34] sm:$0xf] %vm854_vm2, %v2713_v58  ;;  %867 = vst.msk [vmem:[#allocation3 + $0x30] sm:$0xf] %vm854_vm2, %v2712_v59  ;;  %vm645_vm15 = vcmp.eq.s32.totalorder %v3485_v17, %v581_v60  ;;  %vm644_vm0 = vcmp.eq.s32.totalorder %v3485_v17, %v578_v61 }
  0xac   : > { %v2521_v62 = vsel %vm645_vm15, 1.0, %v3216_v23  ;;  %v2520_v63 = vsel %vm644_vm0, 1.0, %v3216_v23 }
  0xad   : > { %v2715_v0 = vpack.c.bf16 %v2521_v62, %v2521_v62  ;;  %v2714_v1 = vpack.c.bf16 %v2520_v63, %v2520_v63 }
  0xae   : > { %v587_v2 = vpop.permute.xlu1 %586  ;;  %v584_v4 = vpop.permute.xlu0 %583 }
  0xaf   : > { %870 = vst.msk [vmem:[#allocation3 + $0x3c] sm:$0xf] %vm854_vm2, %v2715_v0  ;;  %869 = vst.msk [vmem:[#allocation3 + $0x38] sm:$0xf] %vm854_vm2, %v2714_v1  ;;  %vm647_vm1 = vcmp.eq.s32.totalorder %v3485_v17, %v587_v2  ;;  %vm646_vm3 = vcmp.eq.s32.totalorder %v3485_v17, %v584_v4 }
  0xb0   : > { %v2523_v5 = vsel %vm647_vm1, 1.0, %v3216_v23  ;;  %v2522_v6 = vsel %vm646_vm3, 1.0, %v3216_v23 }
  0xb1   : > { %v2717_v7 = vpack.c.bf16 %v2523_v5, %v2523_v5  ;;  %v2716_v8 = vpack.c.bf16 %v2522_v6, %v2522_v6 }
  0xb2   : > { %v593_v9 = vpop.permute.xlu1 %592  ;;  %v590_v10 = vpop.permute.xlu0 %589 }
  0xb3   : > { %872 = vst.msk [vmem:[#allocation3 + $0x44] sm:$0xf] %vm854_vm2, %v2717_v7  ;;  %871 = vst.msk [vmem:[#allocation3 + $0x40] sm:$0xf] %vm854_vm2, %v2716_v8  ;;  %vm649_vm4 = vcmp.eq.s32.totalorder %v3485_v17, %v593_v9  ;;  %vm648_vm5 = vcmp.eq.s32.totalorder %v3485_v17, %v590_v10 }
  0xb4   : > { %v2525_v11 = vsel %vm649_vm4, 1.0, %v3216_v23  ;;  %v2524_v12 = vsel %vm648_vm5, 1.0, %v3216_v23 }
  0xb5   : > { %v2719_v13 = vpack.c.bf16 %v2525_v11, %v2525_v11  ;;  %v2718_v14 = vpack.c.bf16 %v2524_v12, %v2524_v12 }
  0xb6   : > { %v599_v15 = vpop.permute.xlu1 %598  ;;  %v596_v16 = vpop.permute.xlu0 %595 }
  0xb7   : > { %874 = vst.msk [vmem:[#allocation3 + $0x4c] sm:$0xf] %vm854_vm2, %v2719_v13  ;;  %873 = vst.msk [vmem:[#allocation3 + $0x48] sm:$0xf] %vm854_vm2, %v2718_v14  ;;  %vm651_vm6 = vcmp.eq.s32.totalorder %v3485_v17, %v599_v15  ;;  %vm650_vm7 = vcmp.eq.s32.totalorder %v3485_v17, %v596_v16 }
  0xb8   : > { %v2527_v18 = vsel %vm651_vm6, 1.0, %v3216_v23  ;;  %v2526_v19 = vsel %vm650_vm7, 1.0, %v3216_v23 }
  0xb9   : > { %v2721_v20 = vpack.c.bf16 %v2527_v18, %v2527_v18  ;;  %v2720_v21 = vpack.c.bf16 %v2526_v19, %v2526_v19 }
  0xba   : > { %v605_v22 = vpop.permute.xlu1 %604  ;;  %v602_v24 = vpop.permute.xlu0 %601 }
  0xbb   : > { %876 = vst.msk [vmem:[#allocation3 + $0x54] sm:$0xf] %vm854_vm2, %v2721_v20  ;;  %875 = vst.msk [vmem:[#allocation3 + $0x50] sm:$0xf] %vm854_vm2, %v2720_v21  ;;  %vm653_vm8 = vcmp.eq.s32.totalorder %v3485_v17, %v605_v22  ;;  %vm652_vm9 = vcmp.eq.s32.totalorder %v3485_v17, %v602_v24 }
  0xbc   : > { %v2529_v25 = vsel %vm653_vm8, 1.0, %v3216_v23  ;;  %v2528_v26 = vsel %vm652_vm9, 1.0, %v3216_v23 }
  0xbd   : > { %v2723_v3 = vpack.c.bf16 %v2529_v25, %v2529_v25  ;;  %v2722_v27 = vpack.c.bf16 %v2528_v26, %v2528_v26 }
  0xbe   : > { %v611_v28 = vpop.permute.xlu1 %610  ;;  %v608_v29 = vpop.permute.xlu0 %607 }
  0xbf   : > { %878 = vst.msk [vmem:[#allocation3 + $0x5c] sm:$0xf] %vm854_vm2, %v2723_v3  ;;  %877 = vst.msk [vmem:[#allocation3 + $0x58] sm:$0xf] %vm854_vm2, %v2722_v27  ;;  %vm655_vm10 = vcmp.eq.s32.totalorder %v3485_v17, %v611_v28  ;;  %vm654_vm11 = vcmp.eq.s32.totalorder %v3485_v17, %v608_v29 }
  0xc0   : > { %v2531_v30 = vsel %vm655_vm10, 1.0, %v3216_v23  ;;  %v2530_v31 = vsel %vm654_vm11, 1.0, %v3216_v23 }
  0xc1   : > { %v2725_v32 = vpack.c.bf16 %v2531_v30, %v2531_v30  ;;  %v2724_v33 = vpack.c.bf16 %v2530_v31, %v2530_v31 }
  0xc2   : > { %v617_v34 = vpop.permute.xlu1 %616  ;;  %v614_v35 = vpop.permute.xlu0 %613 }
  0xc3   : > { %880 = vst.msk [vmem:[#allocation3 + $0x64] sm:$0xf] %vm854_vm2, %v2725_v32  ;;  %879 = vst.msk [vmem:[#allocation3 + $0x60] sm:$0xf] %vm854_vm2, %v2724_v33  ;;  %vm657_vm12 = vcmp.eq.s32.totalorder %v3485_v17, %v617_v34  ;;  %vm656_vm13 = vcmp.eq.s32.totalorder %v3485_v17, %v614_v35 }
  0xc4   : > { %v2533_v36 = vsel %vm657_vm12, 1.0, %v3216_v23  ;;  %v2532_v37 = vsel %vm656_vm13, 1.0, %v3216_v23 }
  0xc5   : > { %v2727_v38 = vpack.c.bf16 %v2533_v36, %v2533_v36  ;;  %v2726_v39 = vpack.c.bf16 %v2532_v37, %v2532_v37 }
  0xc6   : > { %v623_v40 = vpop.permute.xlu1 %622  ;;  %v620_v41 = vpop.permute.xlu0 %619 }
  0xc7   : > { %882 = vst.msk [vmem:[#allocation3 + $0x6c] sm:$0xf] %vm854_vm2, %v2727_v38  ;;  %881 = vst.msk [vmem:[#allocation3 + $0x68] sm:$0xf] %vm854_vm2, %v2726_v39  ;;  %vm659_vm14 = vcmp.eq.s32.totalorder %v3485_v17, %v623_v40  ;;  %vm658_vm15 = vcmp.eq.s32.totalorder %v3485_v17, %v620_v41 }
  0xc8   : > { %v2535_v42 = vsel %vm659_vm14, 1.0, %v3216_v23  ;;  %v2534_v43 = vsel %vm658_vm15, 1.0, %v3216_v23 }
  0xc9   : > { %v2729_v44 = vpack.c.bf16 %v2535_v42, %v2535_v42  ;;  %v2728_v45 = vpack.c.bf16 %v2534_v43, %v2534_v43 }
  0xca   : > { %v629_v46 = vpop.permute.xlu1 %628  ;;  %v626_v47 = vpop.permute.xlu0 %625 }
  0xcb   : > { %884 = vst.msk [vmem:[#allocation3 + $0x74] sm:$0xf] %vm854_vm2, %v2729_v44  ;;  %883 = vst.msk [vmem:[#allocation3 + $0x70] sm:$0xf] %vm854_vm2, %v2728_v45  ;;  %vm661_vm0 = vcmp.eq.s32.totalorder %v3485_v17, %v629_v46  ;;  %vm660_vm1 = vcmp.eq.s32.totalorder %v3485_v17, %v626_v47 }
  0xcc   : > { %v2537_v48 = vsel %vm661_vm0, 1.0, %v3216_v23  ;;  %v2536_v49 = vsel %vm660_vm1, 1.0, %v3216_v23 }
  0xcd   : > { %v2731_v50 = vpack.c.bf16 %v2537_v48, %v2537_v48  ;;  %v2730_v51 = vpack.c.bf16 %v2536_v49, %v2536_v49 }
  0xcf   : > { %886 = vst.msk [vmem:[#allocation3 + $0x7c] sm:$0xf] %vm854_vm2, %v2731_v50  ;;  %885 = vst.msk [vmem:[#allocation3 + $0x78] sm:$0xf] %vm854_vm2, %v2730_v51 }
  0xd0 PF: > { %v3050_v52 = vld [vmem:[%s3307_s30 + $0x38] sm:$0xff]   ;;  %v3051_v53 = vld [vmem:[%s3307_s30 + $0x30] sm:$0xff]   ;;  %v3052_v23 = vld [vmem:[%s3307_s30 + $0x28] sm:$0xff]   ;;  %vm1326_vm2 = vcmask 1043456   ;;  %vm1277_vm3 = vcmask 64512   ;;  %vm1607_vm4 = vcmask 523264   ;;  %s3919_s29 = scalar_lea.vmem %s3909_s5, %s3297_s23 }
  0xd1   : > { %2862 = vmatprep.subr.bf16.mxu0 %v3050_v52  ;;  %v3053_v17 = vld [vmem:[%s3307_s30 + $0x20] sm:$0xff]   ;;  %v1009_v54 = vld [vmem:[#allocation2 + $0x30] sm:$0xff]  ;;  %v3054_v57 = vld [vmem:[%s3307_s30 + $0x18] sm:$0xff]   ;;  %p2685_p5 = scmp.ne.s32.totalorder %s3291_s22, 3 }
  0xd2   : > { %2863 = vmatpush3.bf16.msra.mxu0 %v3050_v52  ;;  %v1010_v55 = vld [vmem:[#allocation2] sm:$0xff]  ;;  %v3055_v58 = vld [vmem:[%s3307_s30 + $0x10] sm:$0xff]   ;;  %v3056_v59 = vld [vmem:[%s3307_s30 + $0x8] sm:$0xff]  }
  0xd3   : > { %2864 = vmatprep.subr.bf16.mxu0 %v3051_v53  ;;  %v1017_v56 = vpack.c.bf16 %v1010_v55, %v1009_v54  ;;  %v3057_v60 = vld [vmem:[%s3307_s30] sm:$0xff]   ;;  %v1011_v61 = vld [vmem:[#allocation2 + $0x18] sm:$0xff]  ;;  %v1012_v62 = vld [vmem:[#allocation2 + $0x10] sm:$0xff] }
  0xd4   : > { %v1013_v63 = vld [vmem:[#allocation2 + $0x8] sm:$0xff]  ;;  %v1014_v0 = vld [vmem:[#allocation2 + $0x20] sm:$0xff]  ;;  %v1018_v1 = vpack.c.bf16 %v1012_v62, %v1011_v61  ;;  %v1016_v5 = vld [vmem:[#allocation2 + $0x38] sm:$0xff] }
  0xd5   : > { %2878 = vmatprep.mubr.bf16.mxu0 %v1017_v56  ;;  %v1019_v2 = vpack.c.bf16 %v1014_v0, %v1013_v63  ;;  %v1015_v4 = vld [vmem:[#allocation2 + $0x28] sm:$0xff]  ;;  %v1189_v7 = vld [vmem:[%s3313_s16] sm:$0xf]  ;;  %v3060_v11 = vld [vmem:[%s3905_s1 + $0x10] sm:$0xff]  }
  0xd6   : > { %2865 = vmatpush3.bf16.msra.mxu0 %v3051_v53  ;;  %v1020_v6 = vpack.c.bf16 %v1016_v5, %v1015_v4  ;;  %3028 = vmatprep.subr.msk.bf16.mxu1 %vm1326_vm2, %v1189_v7  ;;  %v1328_v8 = vsel %vm1326_vm2, %v1189_v7, 0  ;;  %v3058_v9 = vld [vmem:[%s3905_s1] sm:$0xff]   ;;  %v3059_v10 = vld [vmem:[%s3905_s1 + $0x8] sm:$0xff]   ;;  %v3062_v13 = vld [vmem:[%s3905_s1 + $0x18] sm:$0xff]  }
  0xd7   : > { %2866 = vmatprep.subr.bf16.mxu0 %v3052_v23  ;;  %2887 = vmatpush3.bf16.msra.mxu1 %v1328_v8  ;;  %v3061_v12 = vld [vmem:[#allocation3] sm:$0xff]   ;;  %v3066_v15 = vld [vmem:[%s3905_s1 + $0x28] sm:$0xff]   ;;  %v3068_v16 = vld [vmem:[%s3905_s1 + $0x30] sm:$0xff]  }
  0xd8   : > { %2888 = vmatprep.mubr.msk.bf16.mxu1 %vm1277_vm3, %v3058_v9  ;;  %v3064_v14 = vld [vmem:[%s3905_s1 + $0x20] sm:$0xff]   ;;  %v3070_v18 = vld [vmem:[%s3905_s1 + $0x38] sm:$0xff]   ;;  %v3074_v20 = vld [vmem:[%s3905_s1 + $0x48] sm:$0xff]  }
  0xd9   : > { %v3072_v19 = vld [vmem:[%s3905_s1 + $0x40] sm:$0xff]   ;;  %v3076_v21 = vld [vmem:[%s3905_s1 + $0x50] sm:$0xff]   ;;  %v3078_v22 = vld [vmem:[%s3905_s1 + $0x58] sm:$0xff]  }
  0xda   : > { %2867 = vmatpush3.bf16.msra.mxu0 %v3052_v23  ;;  %2889 = vmatmul.mubr.msk.bf16.vlgmr.msra.gmra.mxu1 %vm1277_vm3, %v3059_v10  ;;  %v3080_v24 = vld [vmem:[%s3905_s1 + $0x60] sm:$0xff]   ;;  %v3082_v25 = vld [vmem:[%s3905_s1 + $0x68] sm:$0xff]   ;;  %v3084_v26 = vld [vmem:[%s3905_s1 + $0x70] sm:$0xff]  }
  0xdb   : > { %2868 = vmatprep.subr.bf16.mxu0 %v3053_v17  ;;  %2892 = vmatprep.mubr.msk.bf16.mxu1 %vm1277_vm3, %v3060_v11  ;;  %v3086_v3 = vld [vmem:[%s3905_s1 + $0x78] sm:$0xff]   ;;  %v3091_v28 = vld [vmem:[%s3322_s25 + $0x30] sm:$0xff]   ;;  %v3092_v29 = vld [vmem:[%s3322_s25 + $0x28] sm:$0xff]  }
  0xdc   : > { %v3090_v27 = vld [vmem:[%s3322_s25 + $0x38] sm:$0xff]   ;;  %v3093_v30 = vld [vmem:[%s3322_s25 + $0x20] sm:$0xff]   ;;  %v3063_v53 = vld [vmem:[#allocation3 + $0x8] sm:$0xff]  }
  0xdd   : > { %2960 = vmatprep.subr.bf16.mxu1 %v3090_v27  ;;  %v3094_v31 = vld [vmem:[%s3322_s25 + $0x18] sm:$0xff]   ;;  %v2594_v38 = vld [vmem:[%s3919_s29] ss:$0 sm:$0xff]  ;;  %v3065_v23 = vld [vmem:[#allocation3 + $0x10] sm:$0xff]  }
  0xde   : > { %2869 = vmatpush3.bf16.msra.mxu0 %v3053_v17  ;;  %2961 = vmatpush3.bf16.msra.mxu1 %v3090_v27  ;;  %v3067_v17 = vld [vmem:[#allocation3 + $0x18] sm:$0xff]   ;;  %v3069_v54 = vld [vmem:[#allocation3 + $0x20] sm:$0xff]   ;;  %v3071_v55 = vld [vmem:[#allocation3 + $0x28] sm:$0xff]  }
  0xdf   : > { %2870 = vmatprep.subr.bf16.mxu0 %v3054_v57  ;;  %2962 = vmatprep.subr.bf16.mxu1 %v3091_v28  ;;  %v3073_v56 = vld [vmem:[#allocation3 + $0x30] sm:$0xff]   ;;  %v3083_v61 = vld [vmem:[#allocation3 + $0x58] sm:$0xff]   ;;  %v3085_v62 = vld [vmem:[#allocation3 + $0x60] sm:$0xff]  }
  0xe0   : > { %v3087_v63 = vld [vmem:[#allocation3 + $0x68] sm:$0xff]   ;;  %v3088_v0 = vld [vmem:[#allocation3 + $0x70] sm:$0xff]   ;;  %v3097_v5 = vld [vmem:[%s3322_s25] sm:$0xff]  }
  0xe1   : > { %v3096_v4 = vld [vmem:[%s3322_s25 + $0x8] sm:$0xff]  }
  0xe2   : > { %2871 = vmatpush3.bf16.msra.mxu0 %v3054_v57  ;;  %2893 = vmatmul.mubr.msk.bf16.gmra.mxu1 %vm1277_vm3, %v3062_v13  ;;  %v3075_v57 = vld [vmem:[#allocation3 + $0x38] sm:$0xff]  }
  0xe3   : > { %2872 = vmatprep.subr.bf16.mxu0 %v3055_v58  ;;  %2896 = vmatprep.mubr.msk.bf16.mxu1 %vm1277_vm3, %v3064_v14 }
  0xe4   : > { %2963 = vmatpush3.bf16.msra.mxu1 %v3091_v28 }
  0xe5   : > { %2964 = vmatprep.subr.bf16.mxu1 %v3092_v29 }
  0xe6   : > { %2873 = vmatpush3.bf16.msra.mxu0 %v3055_v58  ;;  %v3077_v58 = vld [vmem:[#allocation3 + $0x40] sm:$0xff]  }
  0xe7   : > { %2874 = vmatprep.subr.bf16.mxu0 %v3056_v59 }
  0xe8   : > { %2965 = vmatpush3.bf16.msra.mxu1 %v3092_v29 }
  0xe9   : > { %2966 = vmatprep.subr.bf16.mxu1 %v3093_v30 }
  0xea   : > { %2875 = vmatpush3.bf16.msra.mxu0 %v3056_v59  ;;  %2897 = vmatmul.mubr.msk.bf16.gmra.mxu1 %vm1277_vm3, %v3066_v15  ;;  %v3079_v59 = vld [vmem:[#allocation3 + $0x48] sm:$0xff]  }
  0xeb   : > { %2876 = vmatprep.subr.bf16.mxu0 %v3057_v60  ;;  %2900 = vmatprep.mubr.msk.bf16.mxu1 %vm1277_vm3, %v3068_v16 }
  0xec   : > { %2967 = vmatpush3.bf16.msra.mxu1 %v3093_v30 }
  0xed   : > { %2968 = vmatprep.subr.bf16.mxu1 %v3094_v31 }
  0xee   : > { %2877 = vmatpush3.bf16.msra.mxu0 %v3057_v60  ;;  %v3081_v60 = vld [vmem:[#allocation3 + $0x50] sm:$0xff]  }
  0xf0   : > { %2969 = vmatpush3.bf16.msra.mxu1 %v3094_v31 }
  0xf1   : > { %2879 = vmatmul.mubr.bf16.vlgmr.msra.gmra.mxu0 %v1018_v1  ;;  %v3089_v1 = vld [vmem:[#allocation3 + $0x78] sm:$0xff]  }
  0xf2   : > { %2882 = vmatprep.mubr.bf16.mxu0 %v1019_v2  ;;  %2901 = vmatmul.mubr.msk.bf16.gmra.mxu1 %vm1277_vm3, %v3070_v18  ;;  %v3095_v2 = vld [vmem:[%s3322_s25 + $0x10] sm:$0xff]  }
  0xf3   : > { %2904 = vmatprep.mubr.msk.bf16.mxu1 %vm1277_vm3, %v3072_v19  ;;  %2970 = vmatprep.subr.bf16.mxu1 %v3095_v2 }
  0xf4   : > { %2971 = vmatpush3.bf16.msra.mxu1 %v3095_v2 }
  0xf5   : > { %2972 = vmatprep.subr.bf16.mxu1 %v3096_v4 }
  0xf8   : > { %2973 = vmatpush3.bf16.msra.mxu1 %v3096_v4 }
  0xf9   : > { %2883 = vmatmul.mubr.bf16.gmra.mxu0 %v1020_v6  ;;  %2974 = vmatprep.subr.bf16.mxu1 %v3097_v5 }
  0xfa   : > { %2928 = vmatprep.mubr.msk.bf16.mxu0 %vm1607_vm4, %v3061_v12  ;;  %2905 = vmatmul.mubr.msk.bf16.gmra.mxu1 %vm1277_vm3, %v3074_v20 }
  0xfb   : > { %2908 = vmatprep.mubr.msk.bf16.mxu1 %vm1277_vm3, %v3076_v21 }
  0xfc   : > { %2975 = vmatpush3.bf16.msra.mxu1 %v3097_v5 }
 0x102   : > { %2909 = vmatmul.mubr.msk.bf16.gmra.mxu1 %vm1277_vm3, %v3078_v22 }
 0x103   : > { %2912 = vmatprep.mubr.msk.bf16.mxu1 %vm1277_vm3, %v3080_v24 }
 0x10a   : > { %2913 = vmatmul.mubr.msk.bf16.gmra.mxu1 %vm1277_vm3, %v3082_v25 }
 0x10b   : > { %2916 = vmatprep.mubr.msk.bf16.mxu1 %vm1277_vm3, %v3084_v26  ;;  %v3720_v26 = vld [vmem:[%s470_s19] ss:$0 sm:$0xff] }
 0x112   : > { %2917 = vmatmul.mubr.msk.bf16.gmra.mxu1 %vm1277_vm3, %v3086_v3 }
 0x19a   : > { %v2890_v6 = vpop.f32.mrf.mxu1 }
 0x19b   : > { %v1373_v28 = vadd.f32 %v2890_v6, %v3720_v26 }
 0x19c   : > { %v1364_v7 = vpop.f32.mrf.mxu1 }
 0x19d   : > { %v1365_v31 = vadd.f32 %v3720_v26, %v1364_v7 }
 0x19e   : > { %v2891_v8 = vpop.f32.mrf.mxu1 }
 0x19f   : > { %v1376_v29 = vadd.f32 %v2891_v8, %v3720_v26 }
 0x1a0   : > { %v1367_v9 = vpop.f32.mrf.mxu1 }
 0x1a2   : > { %v2894_v10 = vpop.f32.mrf.mxu1 }
 0x1a4   : > { %v1380_v11 = vpop.f32.mrf.mxu1 }
 0x1a6   : > { %v2895_v12 = vpop.f32.mrf.mxu1 }
 0x1a8   : > { %v1383_v13 = vpop.f32.mrf.mxu1 }
 0x1aa   : > { %v2898_v14 = vpop.f32.mrf.mxu1 }
 0x1ab   : > { %v1405_v2 = vadd.f32 %v2898_v14, %v3720_v26 }
 0x1ac   : > { %v1396_v15 = vpop.f32.mrf.mxu1 }
 0x1ad   : > { %v1397_v6 = vadd.f32 %v3720_v26, %v1396_v15 }
 0x1ae   : > { %v2899_v16 = vpop.f32.mrf.mxu1 }
 0x1af   : > { %v1408_v4 = vadd.f32 %v2899_v16, %v3720_v26 }
 0x1b0   : > { %v1399_v18 = vpop.f32.mrf.mxu1 }
 0x1b1   : > { %v2880_v32 = vpop.f32.mrf.mxu0  ;;  %v1400_v7 = vadd.f32 %v3720_v26, %v1399_v18 }
 0x1b2   : > { %v3681_v48 = vadd.f32 %v2880_v32, %v2594_v38  ;;  %v2902_v19 = vpop.f32.mrf.mxu1  ;;  %v1368_v32 = vadd.f32 %v3720_v26, %v1367_v9 }
 0x1b3   : > { %v1126_v33 = vpop.f32.mrf.mxu0  ;;  %v1421_v14 = vadd.f32 %v2902_v19, %v3720_v26 }
 0x1b4   : > { %v3687_v51 = vadd.f32 %v2594_v38, %v1126_v33  ;;  %v3709_v20 = vpop.f32.mrf.mxu1 }
 0x1b5   : > { %v2881_v34 = vpop.f32.mrf.mxu0  ;;  %v1413_v15 = vadd.f32 %v3720_v26, %v3709_v20 }
 0x1b6   : > { %v3677_v46 = vadd.f32 %v2881_v34, %v2594_v38  ;;  %v2903_v21 = vpop.f32.mrf.mxu1 }
 0x1b7   : > { %v1129_v35 = vpop.f32.mrf.mxu0  ;;  %v1424_v16 = vadd.f32 %v2903_v21, %v3720_v26 }
 0x1b8   : > { %v1524_v49 = vpack.c.bf16 %v3677_v46, %v3681_v48  ;;  %v3685_v50 = vadd.f32 %v2594_v38, %v1129_v35  ;;  %v3711_v22 = vpop.f32.mrf.mxu1 }
 0x1b9   : > { %v2884_v36 = vpop.f32.mrf.mxu0  ;;  %v1416_v18 = vadd.f32 %v3720_v26, %v3711_v22 }
 0x1ba   : > { %v3667_v40 = vadd.f32 %v2884_v36, %v2594_v38  ;;  %v1523_v52 = vpack.c.bf16 %v3685_v50, %v3687_v51  ;;  %v3713_v24 = vpop.f32.mrf.mxu1 }
 0x1bb   : > { %v1142_v37 = vpop.f32.mrf.mxu0  ;;  %v1437_v21 = vadd.f32 %v3713_v24, %v3720_v26 }
 0x1bc   : > { %v3671_v43 = vadd.f32 %v2594_v38, %v1142_v37  ;;  %v3722_v27 = vpop.f32.mrf.mxu1 }
 0x1bd   : > { %v2885_v39 = vpop.f32.mrf.mxu0  ;;  %v1429_v22 = vadd.f32 %v3720_v26, %v3722_v27 }
 0x1be   : > { %v3669_v41 = vadd.f32 %v2885_v39, %v2594_v38  ;;  %v3728_v35 = vpop.f32.mrf.mxu1 }
 0x1bf   : > { %v1145_v42 = vpop.f32.mrf.mxu0  ;;  %v1440_v20 = vadd.f32 %v3728_v35, %v3720_v26 }
 0x1c0   : > { %v1526_v44 = vpack.c.bf16 %v3669_v41, %v3667_v40  ;;  %v3675_v45 = vadd.f32 %v2594_v38, %v1145_v42 }
 0x1c2   : > { %v1525_v47 = vpack.c.bf16 %v3675_v45, %v3671_v43  ;;  %2920 = vmatprep.subr.bf16.mxu0 %v1526_v44 }
 0x1c3   : > { %2921 = vmatpush3.bf16.msra.mxu0 %v1526_v44 }
 0x1c4   : > { %2922 = vmatprep.subr.bf16.mxu0 %v1525_v47 }
 0x1c7   : > { %2923 = vmatpush3.bf16.msra.mxu0 %v1525_v47 }
 0x1c8   : > { %2924 = vmatprep.subr.bf16.mxu0 %v1524_v49 }
 0x1cb   : > { %2925 = vmatpush3.bf16.msra.mxu0 %v1524_v49  ;;  %v1431_v49 = vpop.f32.mrf.mxu1 }
 0x1cc   : > { %2926 = vmatprep.subr.bf16.mxu0 %v1523_v52 }
 0x1cf   : > { %2927 = vmatpush3.bf16.msra.mxu0 %v1523_v52  ;;  %v1389_v52 = vadd.f32 %v2894_v10, %v3720_v26 }
 0x1d2   : > { %2929 = vmatmul.mubr.msk.bf16.vlgmr.msra.gmra.mxu0 %vm1607_vm4, %v3063_v53  ;;  %v1392_v53 = vadd.f32 %v2895_v12, %v3720_v26 }
 0x1d3   : > { %2932 = vmatprep.mubr.msk.bf16.mxu0 %vm1607_vm4, %v3065_v23 }
 0x1da   : > { %2933 = vmatmul.mubr.msk.bf16.gmra.mxu0 %vm1607_vm4, %v3067_v17  ;;  %v1381_v17 = vadd.f32 %v3720_v26, %v1380_v11 }
 0x1db   : > { %2936 = vmatprep.mubr.msk.bf16.mxu0 %vm1607_vm4, %v3069_v54  ;;  %v1384_v54 = vadd.f32 %v3720_v26, %v1383_v13 }
 0x1e2   : > { %2937 = vmatmul.mubr.msk.bf16.gmra.mxu0 %vm1607_vm4, %v3071_v55 }
 0x1e3   : > { %2940 = vmatprep.mubr.msk.bf16.mxu0 %vm1607_vm4, %v3073_v56 }
 0x1ea   : > { %2941 = vmatmul.mubr.msk.bf16.gmra.mxu0 %vm1607_vm4, %v3075_v57  ;;  %v3734_v57 = vpop.f32.mrf.mxu1 }
 0x1eb   : > { %2944 = vmatprep.mubr.msk.bf16.mxu0 %vm1607_vm4, %v3077_v58  ;;  %v1453_v35 = vadd.f32 %v3734_v57, %v3720_v26 }
 0x1f2   : > { %2945 = vmatmul.mubr.msk.bf16.gmra.mxu0 %vm1607_vm4, %v3079_v59 }
 0x1f3   : > { %2948 = vmatprep.mubr.msk.bf16.mxu0 %vm1607_vm4, %v3081_v60 }
 0x1fa   : > { %2949 = vmatmul.mubr.msk.bf16.gmra.mxu0 %vm1607_vm4, %v3083_v61 }
 0x1fb   : > { %2952 = vmatprep.mubr.msk.bf16.mxu0 %vm1607_vm4, %v3085_v62 }
 0x202   : > { %2953 = vmatmul.mubr.msk.bf16.gmra.mxu0 %vm1607_vm4, %v3087_v63 }
 0x203   : > { %2956 = vmatprep.mubr.msk.bf16.mxu0 %vm1607_vm4, %v3088_v0 }
 0x20a   : > { %2957 = vmatmul.mubr.msk.bf16.gmra.mxu0 %vm1607_vm4, %v3089_v1  ;;  %v1444_v1 = vpop.f32.mrf.mxu1 }
 0x20c   : > { %v2911_v10 = vpop.f32.mrf.mxu1 }
 0x292   : > { %v2930_v25 = vpop.f32.mrf.mxu0 }
 0x293   : > { %v1819_v38 = vmul.f32 %v2930_v25, %v1373_v28 }
 0x294   : > { %v1690_v3 = vpop.f32.mrf.mxu0 }
 0x295   : > { %v1817_v36 = vmul.f32 %v1690_v3, %v1365_v31 }
 0x296   : > { %v2931_v30 = vpop.f32.mrf.mxu0 }
 0x297   : > { %v1820_v33 = vmul.f32 %v2931_v30, %v1376_v29  ;;  %v1447_v30 = vpop.f32.mrf.mxu1 }
 0x298   : > { %v1693_v34 = vpop.f32.mrf.mxu0 }
 0x299   : > { %v1818_v37 = vmul.f32 %v1693_v34, %v1368_v32  ;;  %v1850_v44 = vpack.c.bf16 %v1820_v33, %v1819_v38  ;;  %v2914_v34 = vpop.f32.mrf.mxu1 }
 0x29a   : > { %v2934_v39 = vpop.f32.mrf.mxu0  ;;  %v1469_v57 = vadd.f32 %v2914_v34, %v3720_v26 }
 0x29b   : > { %v1849_v42 = vpack.c.bf16 %v1818_v37, %v1817_v36  ;;  %v1823_v60 = vmul.f32 %v2934_v39, %v1389_v52 }
 0x29c   : > { %v1706_v47 = vpop.f32.mrf.mxu0 }
 0x29d   : > { %2976 = vmatprep.mubr.bf16.mxu1 %v1849_v42  ;;  %v1821_v58 = vmul.f32 %v1706_v47, %v1381_v17  ;;  %v1460_v47 = vpop.f32.mrf.mxu1 }
 0x29e   : > { %v2935_v23 = vpop.f32.mrf.mxu0  ;;  %2977 = vmatmul.mubr.bf16.vlgmr.msra.gmra.mxu1 %v1850_v44 }
 0x29f   : > { %v1824_v55 = vmul.f32 %v2935_v23, %v1392_v53  ;;  %v1432_v53 = vadd.f32 %v3720_v26, %v1431_v49  ;;  %v1445_v49 = vadd.f32 %v3720_v26, %v1444_v1  ;;  %v1461_v1 = vadd.f32 %v3720_v26, %v1460_v47 }
 0x2a0   : > { %v1709_v56 = vpop.f32.mrf.mxu0 }
 0x2a1   : > { %v1822_v59 = vmul.f32 %v1709_v56, %v1384_v54  ;;  %v1852_v63 = vpack.c.bf16 %v1824_v55, %v1823_v60  ;;  %v2915_v54 = vpop.f32.mrf.mxu1 }
 0x2a2   : > { %v2938_v61 = vpop.f32.mrf.mxu0 }
 0x2a3   : > { %v1851_v62 = vpack.c.bf16 %v1822_v59, %v1821_v58  ;;  %v1827_v13 = vmul.f32 %v2938_v61, %v1405_v2 }
 0x2a4   : > { %v1722_v0 = vpop.f32.mrf.mxu0 }
 0x2a5   : > { %2980 = vmatprep.mubr.bf16.mxu1 %v1851_v62  ;;  %v1825_v11 = vmul.f32 %v1722_v0, %v1397_v6  ;;  %v1463_v62 = vpop.f32.mrf.mxu1  ;;  %v1448_v0 = vadd.f32 %v3720_v26, %v1447_v30 }
 0x2a6   : > { %v2939_v5 = vpop.f32.mrf.mxu0  ;;  %2981 = vmatmul.mubr.bf16.gmra.mxu1 %v1852_v63  ;;  %v1456_v63 = vadd.f32 %v2911_v10, %v3720_v26  ;;  %v1472_v10 = vadd.f32 %v2915_v54, %v3720_v26 }
 0x2a7   : > { %v1828_v8 = vmul.f32 %v2939_v5, %v1408_v4  ;;  %v2918_v5 = vpop.f32.mrf.mxu1 }
 0x2a8   : > { %v1725_v9 = vpop.f32.mrf.mxu0  ;;  %v1485_v34 = vadd.f32 %v2918_v5, %v3720_v26 }
 0x2a9   : > { %v1826_v12 = vmul.f32 %v1725_v9, %v1400_v7  ;;  %v1854_v28 = vpack.c.bf16 %v1828_v8, %v1827_v13  ;;  %v1476_v13 = vpop.f32.mrf.mxu1 }
 0x2aa   : > { %v2942_v25 = vpop.f32.mrf.mxu0 }
 0x2ab   : > { %v1853_v3 = vpack.c.bf16 %v1826_v12, %v1825_v11  ;;  %v1831_v38 = vmul.f32 %v2942_v25, %v1421_v14 }
 0x2ac   : > { %v1738_v29 = vpop.f32.mrf.mxu0 }
 0x2ad   : > { %2984 = vmatprep.mubr.bf16.mxu1 %v1853_v3  ;;  %v1829_v36 = vmul.f32 %v1738_v29, %v1413_v15  ;;  %v2919_v29 = vpop.f32.mrf.mxu1 }
 0x2ae   : > { %v2943_v31 = vpop.f32.mrf.mxu0  ;;  %2985 = vmatmul.mubr.bf16.gmra.mxu1 %v1854_v28  ;;  %v1464_v28 = vadd.f32 %v3720_v26, %v1463_v62 }
 0x2af   : > { %v1832_v32 = vmul.f32 %v2943_v31, %v1424_v16 }
 0x2b0   : > { %v1741_v33 = vpop.f32.mrf.mxu0 }
 0x2b1   : > { %v1830_v37 = vmul.f32 %v1741_v33, %v1416_v18  ;;  %v1856_v44 = vpack.c.bf16 %v1832_v32, %v1831_v38  ;;  %v1488_v38 = vadd.f32 %v2919_v29, %v3720_v26 }
 0x2b2   : > { %v2946_v39 = vpop.f32.mrf.mxu0 }
 0x2b3   : > { %v1855_v42 = vpack.c.bf16 %v1830_v37, %v1829_v36  ;;  %v1835_v58 = vmul.f32 %v2946_v39, %v1437_v21  ;;  %v1479_v36 = vpop.f32.mrf.mxu1 }
 0x2b4   : > { %v1754_v19 = vpop.f32.mrf.mxu0 }
 0x2b5   : > { %2988 = vmatprep.mubr.bf16.mxu1 %v1855_v42  ;;  %v1833_v55 = vmul.f32 %v1754_v19, %v1429_v22  ;;  %v1477_v42 = vadd.f32 %v3720_v26, %v1476_v13 }
 0x2b6   : > { %v2947_v52 = vpop.f32.mrf.mxu0  ;;  %2989 = vmatmul.mubr.bf16.gmra.mxu1 %v1856_v44  ;;  %v1480_v44 = vadd.f32 %v3720_v26, %v1479_v36 }
 0x2b7   : > { %v1836_v23 = vmul.f32 %v2947_v52, %v1440_v20 }
 0x2b8   : > { %v1757_v17 = vpop.f32.mrf.mxu0 }
 0x2b9   : > { %v1834_v56 = vmul.f32 %v1757_v17, %v1432_v53  ;;  %v1858_v61 = vpack.c.bf16 %v1836_v23, %v1835_v58  ;;  %v3100_v23 = vld [vmem:[#allocation4 + $0x4] ss:$24 sps:$4 sm:$0xff]   ;;  %v3771_v17 = vld [vmem:[%s478_s28] ss:$0 sm:$0xff] }
 0x2ba   : > { %v2950_v59 = vpop.f32.mrf.mxu0  ;;  %2225 = vmatprep.mubr.bf16.mxu0 %v3100_v23 }
 0x2bb   : > { %v1857_v60 = vpack.c.bf16 %v1834_v56, %v1833_v55  ;;  %v1839_v8 = vmul.f32 %v2950_v59, %v1453_v35 }
 0x2bc   : > { %v1770_v24 = vpop.f32.mrf.mxu0 }
 0x2bd   : > { %2992 = vmatprep.mubr.bf16.mxu1 %v1857_v60  ;;  %v1837_v6 = vmul.f32 %v1770_v24, %v1445_v49 }
 0x2be   : > { %v2951_v27 = vpop.f32.mrf.mxu0  ;;  %2993 = vmatmul.mubr.bf16.gmra.mxu1 %v1858_v61 }
 0x2bf   : > { %v1840_v2 = vmul.f32 %v2951_v27, %v1456_v63 }
 0x2c0   : > { %v1773_v4 = vpop.f32.mrf.mxu0 }
 0x2c1   : > { %v1838_v7 = vmul.f32 %v1773_v4, %v1448_v0  ;;  %v1860_v12 = vpack.c.bf16 %v1840_v2, %v1839_v8 }
 0x2c2   : > { %v2954_v9 = vpop.f32.mrf.mxu0 }
 0x2c3   : > { %v1859_v11 = vpack.c.bf16 %v1838_v7, %v1837_v6  ;;  %v1843_v15 = vmul.f32 %v2954_v9, %v1469_v57 }
 0x2c4   : > { %v1786_v25 = vpop.f32.mrf.mxu0 }
 0x2c5   : > { %2996 = vmatprep.mubr.bf16.mxu1 %v1859_v11  ;;  %v1841_v16 = vmul.f32 %v1786_v25, %v1461_v1 }
 0x2c6   : > { %v2955_v3 = vpop.f32.mrf.mxu0  ;;  %2997 = vmatmul.mubr.bf16.gmra.mxu1 %v1860_v12 }
 0x2c7   : > { %v1844_v30 = vmul.f32 %v2955_v3, %v1472_v10 }
 0x2c8   : > { %v1789_v14 = vpop.f32.mrf.mxu0 }
 0x2c9   : > { %v1842_v31 = vmul.f32 %v1789_v14, %v1464_v28  ;;  %v1862_v33 = vpack.c.bf16 %v1844_v30, %v1843_v15 }
 0x2ca   : > { %v2958_v18 = vpop.f32.mrf.mxu0 }
 0x2cb   : > { %v1861_v32 = vpack.c.bf16 %v1842_v31, %v1841_v16  ;;  %v1847_v52 = vmul.f32 %v2958_v18, %v1485_v34 }
 0x2cc   : > { %v1802_v37 = vpop.f32.mrf.mxu0 }
 0x2cd   : > { %3000 = vmatprep.mubr.bf16.mxu1 %v1861_v32  ;;  %v1845_v21 = vmul.f32 %v1802_v37, %v1477_v42 }
 0x2ce   : > { %v2959_v39 = vpop.f32.mrf.mxu0  ;;  %3001 = vmatmul.mubr.bf16.gmra.mxu1 %v1862_v33 }
 0x2cf   : > { %v1848_v19 = vmul.f32 %v2959_v39, %v1488_v38 }
 0x2d0   : > { %v1805_v47 = vpop.f32.mrf.mxu0 }
 0x2d1   : > { %v1846_v20 = vmul.f32 %v1805_v47, %v1480_v44  ;;  %v1864_v53 = vpack.c.bf16 %v1848_v19, %v1847_v52 }
 0x2d3   : > { %v1863_v22 = vpack.c.bf16 %v1846_v20, %v1845_v21 }
 0x2d5   : > { %3004 = vmatprep.mubr.bf16.mxu1 %v1863_v22 }
 0x2d6   : > { %3005 = vmatmul.mubr.bf16.gmra.mxu1 %v1864_v53 }
 0x35e   : > { %v2978_v54 = vpop.f32.mrf.mxu1 }
 0x35f   : > { %v1979_v26 = vadd.f32 %v2978_v54, %v3771_v17 }
 0x360   : > { %v1970_v55 = vpop.f32.mrf.mxu1 }
 0x361   : > { %v1971_v56 = vadd.f32 %v3771_v17, %v1970_v55  ;;  %3107 = vtanh.f32 %v1979_v26 }
 0x362   : > { %v2979_v58 = vpop.f32.mrf.mxu1 }
 0x363   : > { %v1982_v59 = vadd.f32 %v2979_v58, %v3771_v17 }
 0x364   : > { %v1973_v60 = vpop.f32.mrf.mxu1 }
 0x365   : > { %3109 = vtanh.f32 %v1982_v59  ;;  %v1974_v61 = vadd.f32 %v3771_v17, %v1973_v60 }
 0x366   : > { %3111 = vtanh.f32 %v1971_v56  ;;  %v2982_v24 = vpop.f32.mrf.mxu1 }
 0x367   : > { %3113 = vtanh.f32 %v1974_v61  ;;  %v1995_v62 = vadd.f32 %v2982_v24, %v3771_v17 }
 0x368   : > { %v1986_v35 = vpop.f32.mrf.mxu1 }
 0x369   : > { %v1987_v63 = vadd.f32 %v3771_v17, %v1986_v35  ;;  %3115 = vtanh.f32 %v1995_v62 }
 0x36a   : > { %v2983_v27 = vpop.f32.mrf.mxu1 }
 0x36b   : > { %v1998_v49 = vadd.f32 %v2983_v27, %v3771_v17 }
 0x36c   : > { %v1989_v0 = vpop.f32.mrf.mxu1 }
 0x36d   : > { %3117 = vtanh.f32 %v1998_v49  ;;  %v1990_v2 = vadd.f32 %v3771_v17, %v1989_v0 }
 0x36e   : > { %3119 = vtanh.f32 %v1987_v63  ;;  %v2986_v4 = vpop.f32.mrf.mxu1  ;;  %v3783_v6 = vpop.eup %3107 }
 0x36f   : > { %3121 = vtanh.f32 %v1990_v2  ;;  %v2011_v62 = vadd.f32 %v2986_v4, %v3771_v17 }
 0x370   : > { %v3781_v5 = vpop.f32.mrf.mxu1 }
 0x371   : > { %v2003_v49 = vadd.f32 %v3771_v17, %v3781_v5 }
 0x372   : > { %v3785_v7 = vpop.eup %3109  ;;  %v2987_v8 = vpop.f32.mrf.mxu1 }
 0x373   : > { %v3787_v9 = vpop.eup %3111  ;;  %v2138_v11 = vpack.c.bf16 %v3785_v7, %v3783_v6  ;;  %v2014_v61 = vadd.f32 %v2987_v8, %v3771_v17  ;;  %v3106_v6 = vld [vmem:[#allocation4 + $0x30] ss:$8 sps:$4 sm:$0xff]  }
 0x374   : > { %v3791_v12 = vpop.eup %3113  ;;  %v2005_v13 = vpop.f32.mrf.mxu1 }
 0x375   : > { %v2137_v25 = vpack.c.bf16 %v3791_v12, %v3787_v9  ;;  %v2006_v63 = vadd.f32 %v3771_v17, %v2005_v13 }
 0x376   : > { %v2990_v57 = vpop.f32.mrf.mxu1  ;;  %v3795_v3 = vpop.eup %3115 }
 0x377   : > { %v2027_v47 = vadd.f32 %v2990_v57, %v3771_v17 }
 0x378   : > { %v2018_v10 = vpop.f32.mrf.mxu1 }
 0x379   : > { %3123 = vtanh.f32 %v2027_v47  ;;  %v2019_v59 = vadd.f32 %v3771_v17, %v2018_v10 }
 0x37a   : > { %v3797_v1 = vpop.eup %3117  ;;  %v2991_v28 = vpop.f32.mrf.mxu1 }
 0x37b   : > { %v3799_v29 = vpop.eup %3119  ;;  %v2140_v30 = vpack.c.bf16 %v3797_v1, %v3795_v3  ;;  %v2030_v20 = vadd.f32 %v2991_v28, %v3771_v17  ;;  %v3101_v3 = vld [vmem:[#allocation4 + $0x14] ss:$16 sps:$4 sm:$0xff]   ;;  %v2133_v1 = vld [vmem:[#allocation4 + $0x28] sm:$0xff] }
 0x37c   : > { %v3803_v14 = vpop.eup %3121  ;;  %v2021_v16 = vpop.f32.mrf.mxu1 }
 0x37d   : > { %v2139_v31 = vpack.c.bf16 %v3803_v14, %v3799_v29  ;;  %3125 = vtanh.f32 %v2030_v20  ;;  %v2022_v26 = vadd.f32 %v3771_v17, %v2021_v16  ;;  %v3103_v29 = vld [vmem:[#allocation4 + $0x10] ss:$16 sps:$4 sm:$0xff]  }
 0x37e   : > { %v3807_v15 = vpop.f32.mrf.mxu1 }
 0x380   : > { %v3809_v18 = vpop.f32.mrf.mxu1 }
 0x382   : > { %v2995_v32 = vpop.f32.mrf.mxu1 }
 0x384   : > { %v3811_v33 = vpop.f32.mrf.mxu1 }
 0x385   : > { %v2038_v20 = vadd.f32 %v3771_v17, %v3811_v33 }
 0x386   : > { %v2998_v36 = vpop.f32.mrf.mxu1  ;;  %v3124_v0 = vpop.eup %3123 }
 0x387   : > { %v2059_v2 = vadd.f32 %v2998_v36, %v3771_v17 }
 0x388   : > { %v2050_v37 = vpop.f32.mrf.mxu1 }
 0x389   : > { %v2051_v28 = vadd.f32 %v3771_v17, %v2050_v37 }
 0x38a   : > { %v2999_v34 = vpop.f32.mrf.mxu1  ;;  %v3126_v8 = vpop.eup %3125 }
 0x38b   : > { %v2062_v27 = vadd.f32 %v2999_v34, %v3771_v17 }
 0x38c   : > { %v2053_v38 = vpop.f32.mrf.mxu1 }
 0x38d   : > { %v2054_v57 = vadd.f32 %v3771_v17, %v2053_v38  ;;  %v2043_v38 = vadd.f32 %v3807_v15, %v3771_v17 }
 0x38e   : > { %v3002_v39 = vpop.f32.mrf.mxu1 }
 0x38f   : > { %v2075_v60 = vadd.f32 %v3002_v39, %v3771_v17  ;;  %v2144_v39 = vpack.c.bf16 %v3126_v8, %v3124_v0  ;;  %v3104_v0 = vld [vmem:[#allocation4 + $0x34] ss:$8 sps:$4 sm:$0xff]  }
 0x390   : > { %v2066_v42 = vpop.f32.mrf.mxu1 }
 0x391   : > { %v2067_v35 = vadd.f32 %v3771_v17, %v2066_v42  ;;  %v2046_v42 = vadd.f32 %v2995_v32, %v3771_v17 }
 0x392   : > { %v3003_v44 = vpop.f32.mrf.mxu1 }
 0x393   : > { %v2078_v56 = vadd.f32 %v3003_v44, %v3771_v17 }
 0x394   : > { %v2069_v19 = vpop.f32.mrf.mxu1 }
 0x395   : > { %v2070_v24 = vadd.f32 %v3771_v17, %v2069_v19 }
 0x396   : > { %v3006_v21 = vpop.f32.mrf.mxu1 }
 0x397   : > { %v2091_v52 = vadd.f32 %v3006_v21, %v3771_v17 }
 0x398   : > { %v2082_v22 = vpop.f32.mrf.mxu1 }
 0x399   : > { %v2083_v53 = vadd.f32 %v3771_v17, %v2082_v22  ;;  %3127 = vtanh.f32 %v2091_v52 }
 0x39a   : > { %v3007_v23 = vpop.f32.mrf.mxu1 }
 0x39b   : > { %v2094_v54 = vadd.f32 %v3007_v23, %v3771_v17 }
 0x39c   : > { %v2085_v55 = vpop.f32.mrf.mxu1 }
 0x39d   : > { %3129 = vtanh.f32 %v2094_v54  ;;  %v2086_v58 = vadd.f32 %v3771_v17, %v2085_v55 }
 0x39e   : > { %3131 = vtanh.f32 %v2083_v53  ;;  %v2035_v53 = vadd.f32 %v3771_v17, %v3809_v18 }
 0x39f   : > { %3133 = vtanh.f32 %v2086_v58 }
 0x3a0   : > { %3135 = vtanh.f32 %v2022_v26 }
 0x3a1   : > { %3137 = vtanh.f32 %v2078_v56 }
 0x3a2   : > { %3139 = vtanh.f32 %v2019_v59 }
 0x3a3   : > { %3141 = vtanh.f32 %v2075_v60 }
 0x3a4   : > { %3143 = vtanh.f32 %v2014_v61 }
 0x3a5   : > { %3145 = vtanh.f32 %v2070_v24 }
 0x3a6   : > { %3147 = vtanh.f32 %v2011_v62  ;;  %v3128_v4 = vpop.eup %3127 }
 0x3a7   : > { %3149 = vtanh.f32 %v2067_v35 }
 0x3a8   : > { %3151 = vtanh.f32 %v2006_v63 }
 0x3a9   : > { %3153 = vtanh.f32 %v2062_v27 }
 0x3aa   : > { %v3130_v10 = vpop.eup %3129  ;;  %3155 = vtanh.f32 %v2003_v49  ;;  %v3098_v49 = vld [vmem:[#allocation4] ss:$24 sps:$4 sm:$0xff]  }
 0x3ab   : > { %v3132_v13 = vpop.eup %3131  ;;  %3157 = vtanh.f32 %v2059_v2  ;;  %v2152_v16 = vpack.c.bf16 %v3130_v10, %v3128_v4 }
 0x3ac   : > { %v3134_v34 = vpop.eup %3133  ;;  %3159 = vtanh.f32 %v2054_v57 }
 0x3ad   : > { %v3136_v5 = vpop.eup %3135  ;;  %2813 = vmatprep.subr.bf16.mxu0 %v2152_v16  ;;  %v2151_v36 = vpack.c.bf16 %v3134_v34, %v3132_v13  ;;  %3161 = vtanh.f32 %v2051_v28 }
 0x3ae   : > { %v3138_v44 = vpop.eup %3137  ;;  %2814 = vmatpush3.bf16.msra.mxu0 %v2144_v39  ;;  %3163 = vtanh.f32 %v2046_v42 }
 0x3af   : > { %v3140_v19 = vpop.eup %3139  ;;  %2815 = vmatprep.subr.bf16.mxu0 %v2151_v36  ;;  %3165 = vtanh.f32 %v2043_v38 }
 0x3b0   : > { %v3142_v47 = vpop.eup %3141  ;;  %v2143_v21 = vpack.c.bf16 %v3136_v5, %v3140_v19  ;;  %3167 = vtanh.f32 %v2038_v20 }
 0x3b1   : > { %v3144_v37 = vpop.eup %3143  ;;  %v2150_v52 = vpack.c.bf16 %v3138_v44, %v3142_v47  ;;  %3169 = vtanh.f32 %v2035_v53 }
 0x3b2   : > { %v3146_v32 = vpop.eup %3145  ;;  %2816 = vmatpush3.bf16.msra.mxu0 %v2143_v21 }
 0x3b3   : > { %v3148_v22 = vpop.eup %3147  ;;  %2817 = vmatprep.subr.bf16.mxu0 %v2150_v52 }
 0x3b4   : > { %v3150_v23 = vpop.eup %3149  ;;  %v2142_v15 = vpack.c.bf16 %v3144_v37, %v3148_v22 }
 0x3b5   : > { %v3152_v54 = vpop.eup %3151  ;;  %v2149_v26 = vpack.c.bf16 %v3146_v32, %v3150_v23 }
 0x3b6   : > { %v3154_v55 = vpop.eup %3153  ;;  %2818 = vmatpush3.bf16.msra.mxu0 %v2142_v15 }
 0x3b7   : > { %v3156_v56 = vpop.eup %3155  ;;  %2819 = vmatprep.subr.bf16.mxu0 %v2149_v26 }
 0x3b8   : > { %v3158_v33 = vpop.eup %3157  ;;  %v2141_v58 = vpack.c.bf16 %v3152_v54, %v3156_v56 }
 0x3b9   : > { %v2148_v59 = vpack.c.bf16 %v3154_v55, %v3158_v33  ;;  %v3160_v60 = vpop.eup %3159 }
 0x3ba   : > { %2820 = vmatpush3.bf16.msra.mxu0 %v2141_v58  ;;  %v3162_v61 = vpop.eup %3161 }
 0x3bb   : > { %2821 = vmatprep.subr.bf16.mxu0 %v2148_v59  ;;  %v2147_v24 = vpack.c.bf16 %v3160_v60, %v3162_v61  ;;  %v3164_v17 = vpop.eup %3163 }
 0x3bc   : > { %v3166_v18 = vpop.eup %3165 }
 0x3bd   : > { %v2146_v62 = vpack.c.bf16 %v3164_v17, %v3166_v18  ;;  %v3168_v35 = vpop.eup %3167 }
 0x3be   : > { %2822 = vmatpush3.bf16.msra.mxu0 %v2140_v30  ;;  %v3170_v63 = vpop.eup %3169  ;;  %v2134_v30 = vld [vmem:[#allocation4 + $0x8] sm:$0xff] }
 0x3bf   : > { %2823 = vmatprep.subr.bf16.mxu0 %v2147_v24  ;;  %v2145_v27 = vpack.c.bf16 %v3168_v35, %v3170_v63  ;;  %v2682_v14 = vcombine.high %v2133_v1, %v2134_v30 }
 0x3c2   : > { %2824 = vmatpush3.bf16.msra.mxu0 %v2139_v31  ;;  %v2681_v31 = vcombine.low %v2133_v1, %v2134_v30 }
 0x3c3   : > { %2825 = vmatprep.subr.bf16.mxu0 %v2146_v62 }
 0x3c6   : > { %2826 = vmatpush3.bf16.msra.mxu0 %v2138_v11 }
 0x3c7   : > { %2827 = vmatprep.subr.bf16.mxu0 %v2145_v27 }
 0x3ca   : > { %2828 = vmatpush3.bf16.msra.mxu0 %v2137_v25 }
 0x3cd   : > { %2226 = vmatmul.mubr.bf16.vlgmr.msra.gmra.mxu0 %v3098_v49 }
 0x3ce   : > { %2233 = vmatprep.mubr.bf16.mxu0 %v3101_v3 }
 0x3d5   : > { %2234 = vmatmul.mubr.bf16.gmra.mxu0 %v3103_v29 }
 0x3d6   : > { %2241 = vmatprep.mubr.bf16.mxu0 %v2682_v14 }
 0x3dd   : > { %2242 = vmatmul.mubr.bf16.gmra.mxu0 %v2681_v31 }
 0x3de   : > { %2249 = vmatprep.mubr.bf16.mxu0 %v3104_v0 }
 0x3e5   : > { %2250 = vmatmul.mubr.bf16.gmra.mxu0 %v3106_v6 }
 0x48d   : > { %v2829_v7 = vpop.f32.mrf.mxu0 }
 0x48f   : > { %v2830_v11 = vpop.f32.mrf.mxu0 }
 0x490   : > { %v2831_v2 = vadd.f32 %v2830_v11, %v2829_v7 }
 0x491   : > { %v2832_v9 = vpop.f32.mrf.mxu0 }
 0x492   : > { %v2258_v12 = vadd.f32 %v2831_v2, %v3687_v51 }
 0x493   : > { %v2833_v25 = vpop.f32.mrf.mxu0 }
 0x494   : > { %2266 = vst [vmem:[#allocation2 + $0x30] sm:$0xff] %v2258_v12  ;;  %v2834_v8 = vadd.f32 %v2833_v25, %v2832_v9 }
 0x495   : > { %v2835_v4 = vpop.f32.mrf.mxu0 }
 0x496   : > { %v2259_v57 = vadd.f32 %v2834_v8, %v3685_v50 }
 0x497   : > { %v2836_v10 = vpop.f32.mrf.mxu0 }
 0x498   : > { %2267 = vst [vmem:[#allocation2] sm:$0xff] %v2259_v57  ;;  %v2837_v13 = vadd.f32 %v2836_v10, %v2835_v4 }
 0x499   : > { %v2838_v28 = vpop.f32.mrf.mxu0 }
 0x49a   : > { %v2260_v16 = vadd.f32 %v2837_v13, %v3681_v48 }
 0x49b   : > { %v2839_v34 = vpop.f32.mrf.mxu0 }
 0x49c   : > { %2268 = vst [vmem:[#allocation2 + $0x18] sm:$0xff] %v2260_v16  ;;  %v2840_v39 = vadd.f32 %v2839_v34, %v2838_v28 }
 0x49d   : > { %v2841_v5 = vpop.f32.mrf.mxu0 }
 0x49e   : > { %v2261_v42 = vadd.f32 %v2840_v39, %v3677_v46 }
 0x49f   : > { %v2842_v36 = vpop.f32.mrf.mxu0 }
 0x4a0   : > { %2269 = vst [vmem:[#allocation2 + $0x10] sm:$0xff] %v2261_v42  ;;  %v2843_v51 = vadd.f32 %v2842_v36, %v2841_v5 }
 0x4a1   : > { %v2844_v44 = vpop.f32.mrf.mxu0 }
 0x4a2   : > { %v2262_v19 = vadd.f32 %v2843_v51, %v3671_v43 }
 0x4a3   : > { %v2845_v38 = vpop.f32.mrf.mxu0 }
 0x4a4   : > { %2270 = vst [vmem:[#allocation2 + $0x8] sm:$0xff] %v2262_v19  ;;  %v2846_v50 = vadd.f32 %v2845_v38, %v2844_v44 }
 0x4a5   : > { %v2847_v47 = vpop.f32.mrf.mxu0 }
 0x4a6   : > { %v2263_v21 = vadd.f32 %v2846_v50, %v3675_v45 }
 0x4a7   : > { %v2848_v37 = vpop.f32.mrf.mxu0 }
 0x4a8   : > { %2271 = vst [vmem:[#allocation2 + $0x20] sm:$0xff] %v2263_v21  ;;  %v2849_v48 = vadd.f32 %v2848_v37, %v2847_v47 }
 0x4a9   : > { %v2850_v20 = vpop.f32.mrf.mxu0 }
 0x4aa   : > { %v2264_v52 = vadd.f32 %v2849_v48, %v3667_v40 }
 0x4ab   : > { %v2851_v32 = vpop.f32.mrf.mxu0 }
 0x4ac   : > { %2272 = vst [vmem:[#allocation2 + $0x28] sm:$0xff] %v2264_v52  ;;  %v2852_v46 = vadd.f32 %v2851_v32, %v2850_v20  ;;  %2277 = sbr.rel (%p2685_p5) target bundleno = 1433 (0x599), region = 76 }
 0x4ae   : > { %v2265_v22 = vadd.f32 %v2852_v46, %v3669_v41 }
 0x4b0   : > { %2273 = vst [vmem:[#allocation2 + $0x38] sm:$0xff] %v2265_v22 }
 0x4b1   : > { %v3171_v43 = vld [vmem:[%s3914_s10 + $0x38] sm:$0xff]   ;;  %v2278_v45 = vadd.f32 %v2259_v57, %v2258_v12  ;;  %v3217_v53 = vmov 0.0   ;;  %v3172_v40 = vld [vmem:[%s3914_s10 + $0x30] sm:$0xff]   ;;  %vm3218_vm5 = vmmov 0   ;;  %v3173_v15 = vld [vmem:[%s3914_s10 + $0x28] sm:$0xff]  }
 0x4b2   : > { %3008 = vmatprep.subr.bf16.mxu0 %v3217_v53  ;;  %3024 = vmatprep.mubr.msk.bf16.mxu0 %vm3218_vm5, %v3217_v53  ;;  %v3174_v55 = vld [vmem:[%s3914_s10 + $0x20] sm:$0xff]   ;;  %v3175_v58 = vld [vmem:[%s3914_s10 + $0x18] sm:$0xff]   ;;  %v3176_v61 = vld [vmem:[%s3914_s10 + $0x10] sm:$0xff]  }
 0x4b3   : > { %3009 = vmatpush3.bf16.msra.mxu0 %v3171_v43  ;;  %v2279_v23 = vadd.f32 %v2278_v45, %v2260_v16  ;;  %v3177_v18 = vld [vmem:[%s3914_s10 + $0x8] sm:$0xff]   ;;  %v3178_v63 = vld [vmem:[%s3914_s10] sm:$0xff]  }
 0x4b4   : > { %3010 = vmatprep.subr.bf16.mxu0 %v3217_v53  ;;  %v2309_v3 = vld [vmem:[%s3915_s11] sm:$0x1] }
 0x4b5   : > { %v2280_v41 = vadd.f32 %v2279_v23, %v2261_v42 }
 0x4b7   : > { %3011 = vmatpush3.bf16.msra.mxu0 %v3172_v40  ;;  %v2281_v54 = vadd.f32 %v2280_v41, %v2262_v19 }
 0x4b8   : > { %3012 = vmatprep.subr.bf16.mxu0 %v3217_v53 }
 0x4b9   : > { %v2282_v26 = vadd.f32 %v2281_v54, %v2263_v21 }
 0x4bb   : > { %3013 = vmatpush3.bf16.msra.mxu0 %v3173_v15  ;;  %v2283_v56 = vadd.f32 %v2282_v26, %v2264_v52 }
 0x4bc   : > { %3014 = vmatprep.subr.bf16.mxu0 %v3217_v53 }
 0x4bd   : > { %v2284_v33 = vadd.f32 %v2283_v56, %v2265_v22 }
 0x4bf   : > { %3015 = vmatpush3.bf16.msra.mxu0 %v3174_v55  ;;  %v2285_v59 = vrot.slane %v2284_v33, 4 }
 0x4c0   : > { %3016 = vmatprep.subr.bf16.mxu0 %v3217_v53 }
 0x4c1   : > { %v2286_v60 = vadd.f32 %v2285_v59, %v2284_v33 }
 0x4c3   : > { %3017 = vmatpush3.bf16.msra.mxu0 %v3175_v58  ;;  %v2287_v24 = vrot.slane %v2286_v60, 2 }
 0x4c4   : > { %3018 = vmatprep.subr.bf16.mxu0 %v3217_v53 }
 0x4c5   : > { %v2288_v17 = vadd.f32 %v2287_v24, %v2286_v60 }
 0x4c7   : > { %3019 = vmatpush3.bf16.msra.mxu0 %v3176_v61  ;;  %v2289_v62 = vrot.slane %v2288_v17, 1 }
 0x4c8   : > { %3020 = vmatprep.subr.bf16.mxu0 %v3217_v53 }
 0x4c9   : > { %v2290_v35 = vadd.f32 %v2289_v62, %v2288_v17 }
 0x4cb   : > { %3021 = vmatpush3.bf16.msra.mxu0 %v3177_v18  ;;  %v2291_v27 = vmul.f32 0.015625, %v2290_v35 }
 0x4cc   : > { %3022 = vmatprep.subr.bf16.mxu0 %v3217_v53 }
 0x4cd   : > { %v2292_v49 = vpack.c.bf16 %v2291_v27, %v2291_v27 }
 0x4cf   : > { %3023 = vmatpush3.bf16.msra.mxu0 %v3178_v63 }
 0x4d2   : > { %3025 = vmatmul.mubr.bf16.vlgmr.msra.gmra.mxu0 %v2292_v49 }
 0x592   : > { %v2392_v1 = vpop.f32.mrf.mxu0 }
 0x593   : > { %v2393_v30 = vadd.f32 %v2392_v1, %v2309_v3 }
 0x594   : > { %v3026_v29 = vpop.f32.mrf.mxu0 }
 0x595   : > { %2398 = vst [vmem:[#allocation5] sm:$0x1] %v2393_v30 }
 0x596   : > { %v2395_v14 = vpop.f32.mrf.mxu0 }
 0x598   : > { %v3027_v31 = vpop.f32.mrf.mxu0 }
 0x599 PF: > { %p3033_p6 = scmp.eq.s32.totalorder %s3291_s22, 3  ;;  %s3219_s28 = smov [#allocation5]  }
 0x59a   : > { %s2406_s15 = sshll.u32 %s3219_s28, 4  ;;  %s2407_s15 = int_to_ptr.vmem [resolvable:$true] %s2406_s15 }
 0x59b   : > { %s3179_s21 = scalar_lea.vmem %s2407_s15, 16  ;;  %s3185_s30 = scalar_lea.vmem %s2407_s15, 32 }
 0x59c   : > { %p3180_p7 = scmp.ne.s32.totalorder %s2407_s15, %s3179_s21  ;;  %p3186_p10 = scmp.lt.s32.totalorder %s2407_s15, %s2407_s15 }
 0x59d   : > { %p3187_p11 = scmp.lt.s32.totalorder %s3185_s30, %s3179_s21 }
 0x59e   : > { %p3181_p8 = pnand %p3180_p7, %p3033_p6 }
 0x59f   : > { %p3188_p12 = por %p3187_p11, %p3186_p10 }
 0x5a0   : > { %p3182_p9 = pneg %p3181_p8 }
 0x5a2   : > { %p3189_p13 = pnand %p3188_p12, %p3182_p9 }
 0x5a4   : > { %3192 = shalt.err (!%p3189_p13)
}
 0x5a5   : > { %3030 = dma.vmem_to_hbm [thread:$0]  (%p3033_p6), %s2407_s15, 16, %s3916_s12, [#allocation6]  }
 0x5a6   : > { %3208 = dma.done.wait (%p3033_p6), [#allocation6], 16  }
 0x5a7   : > { %3210 = vsyncadd (%p3033_p6), [#allocation6], 4294967280 }
 0x5a8 PF: > { %s3920_s17 = sld [smem:[#allocation8_spill]] }
 0x5ae   : > { %s23_s21 = sadd.s32 1, %s3920_s17  }
 0x5af   : > { %p20_p0 = scmp.ge.s32.totalorder %s23_s21, 6  }
 0x5b1   :  { %22 = sbr.rel (!%p20_p0) target bundleno = 1 (0x1), region = 118 }
 0x5b6   :  { %2419 = vsyncpa [#allocation6], 1 }
 0x5b7   :  { %2421 = vsyncpa [#allocation6 + $0x1], 1 }

</bundles_post_ra>
